<compile_context>
chip_gen: v7x
topology: tpu7x:2x2x1
jax: 0.10.0
libtpu: 0.0.40
codegen_flags: <defaults>
</compile_context>

<pallas_src>
import functools

import jax
import jax.numpy as jnp
from jax import lax
from jax.experimental import pallas as pl
from jax.experimental.pallas import tpu as pltpu

_VMEM_LIMIT_BYTES = 48 * 1024 * 1024  # < 64 MiB physical on v7x, well under 128 MiB on v5e/v6e


def _round_up(a, b):
    return (a + b - 1) // b * b


# --------------------------- Pallas kernel (whole block, fused) ---------------------------

def _resblock_kernel(planes_ref, w1g_ref, w2_ref, wdg_ref, b1_ref, bd_ref,
                     out_ref, o1f_ref, *, offs1, res_off, ws, wo, s_int):
    """One batch element per grid step.

    planes_ref : (1, Lp, P2*Cp)   channel-stacked parity planes of the padded input (compute dtype)
    w1g_ref    : (G, P2*Cp, Co)   conv1 weights grouped by flat tap offset, bn1 scale folded in
    w2_ref     : (9*Co, Co)       per-tap conv2 weights (tap-major), bn1 scale folded in
    wdg_ref    : (P2*Cp, Co)      1x1 downsample weights, bn_d scale folded in
    b1_ref/bd_ref : (1, Co) f32   folded BatchNorm biases (bn1 and bn_d)
    out_ref    : (1, Mflat, Co)   flat output slab (lane-dense, Co % 128 == 0), compute dtype
    o1f_ref    : (Lo, Co)         VMEM staging of conv1 output with zero halo, compute dtype
    """
    mflat = out_ref.shape[1]
    co = out_ref.shape[2]
    lo = o1f_ref.shape[0]
    cdt = o1f_ref.dtype

    # ---- conv1 (3x3, stride s0; bn1 scale folded into weights): taps merged by flat offset ----
    off0 = offs1[0]
    acc = jnp.dot(planes_ref[0, off0:off0 + mflat, :], w1g_ref[0],
                  preferred_element_type=jnp.float32)
    for g in range(1, len(offs1)):
        off = offs1[g]
        acc = acc + jnp.dot(planes_ref[0, off:off + mflat, :], w1g_ref[g],
                            preferred_element_type=jnp.float32)

    # bn1 bias + relu; zero the junk flat-layout columns (col >= Wo) so they never leak into
    # conv2's halo reads.
    col = lax.broadcasted_iota(jnp.int32, (mflat, 1), 0) % ws
    o1 = jnp.where(col < wo, jnp.maximum(acc + b1_ref[...], 0.0), 0.0)

    # ---- stage o1 in VMEM (compute dtype); zero only the halo bands.  Must re-zero every grid
    #      step: the "parallel" batch axis may be split across TensorCores (megacore). ----
    o1f_ref[0:s_int, :] = jnp.zeros((s_int, co), cdt)
    o1f_ref[s_int + mflat:lo, :] = jnp.zeros((lo - s_int - mflat, co), cdt)
    o1f_ref[s_int:s_int + mflat, :] = o1.astype(cdt)

    # ---- conv2 (3x3, stride 1) + bn1 again (module quirk: bn2 exists but is never used).
    #      Taps fused pairwise along the contraction dim -> K = 2*Co matmuls (4 pairs + 1). ----
    def tap_off(t):
        return s_int + (t // 3 - 1) * ws + (t % 3 - 1)

    acc2 = None
    for p in range(4):
        oa, ob = tap_off(2 * p), tap_off(2 * p + 1)
        lhs = jnp.concatenate([o1f_ref[oa:oa + mflat, :],
                               o1f_ref[ob:ob + mflat, :]], axis=-1)   # 128-lane aligned chunks
        d = jnp.dot(lhs, w2_ref[2 * p * co:(2 * p + 2) * co, :],
                    preferred_element_type=jnp.float32)
        acc2 = d if acc2 is None else acc2 + d
    o8 = tap_off(8)
    acc2 = acc2 + jnp.dot(o1f_ref[o8:o8 + mflat, :], w2_ref[8 * co:9 * co, :],
                          preferred_element_type=jnp.float32)
    main = acc2 + b1_ref[...]

    # ---- downsample residual (1x1 conv, stride s0; bn_d scale folded into weights), fused ----
    res = jnp.dot(planes_ref[0, res_off:res_off + mflat, :], wdg_ref[...],
                  preferred_element_type=jnp.float32) + bd_ref[...]

    out_ref[0] = jnp.maximum(main + res, 0.0).astype(out_ref.dtype)


# ------------------------------- host-side glue -------------------------------

def _build_stacked_parity_planes(x_nhwc, s, ws, lp, dtype):
    """Channel-stacked parity planes of the zero-padded input (a re-arrangement, not im2col).

    Returns (N, lp, s*s*C): plane (p,q) of xpad (i.e. xpad[s*A+p, s*B+q]) lives at flat row
    A*ws + B in channel block p*s+q.  Zero-filled in the alignment columns / tail rows.
    """
    N, H, W, C = x_nhwc.shape
    xp = jnp.pad(x_nhwc, ((0, 0), (1, 1), (1, 1), (0, 0)))          # conv padding = 1
    Hp, Wp = H + 2, W + 2
    ha = -(-Hp // s)
    wa = -(-Wp // s)
    xp = jnp.pad(xp, ((0, 0), (0, ha * s - Hp), (0, wa * s - Wp), (0, 0)))
    p = xp.reshape(N, ha, s, wa, s, C).transpose(0, 1, 3, 2, 4, 5)  # (N, ha, wa, s, s, C)
    p = jnp.pad(p, ((0, 0), (0, 0), (0, ws - wa), (0, 0), (0, 0), (0, 0)))
    p = p.reshape(N, ha * ws, s * s * C)
    p = jnp.pad(p, ((0, 0), (0, lp - ha * ws), (0, 0)))
    return p.astype(dtype)


def _grouped_conv1_weights(w_oihw, scale, s0, ws, cp, co):
    """Group the 9 conv1 taps by their flat row offset; fold the bn1 scale into the weights.

    Returns (offsets, (G, s0*s0*cp, co)) where group g multiplies the channel-stacked planes
    slice starting at flat offset offsets[g]."""
    cout, cin, _, _ = w_oihw.shape
    w = jnp.transpose(w_oihw, (2, 3, 1, 0)) * scale[None, None, None, :]   # (3,3,cin,cout)
    offsets = sorted({(ki // s0) * ws + (kj // s0) for ki in range(3) for kj in range(3)})
    gidx = {o: i for i, o in enumerate(offsets)}
    p2 = s0 * s0
    wg = jnp.zeros((len(offsets), p2 * cp, co), jnp.float32)
    for ki in range(3):
        for kj in range(3):
            g = gidx[(ki // s0) * ws + (kj // s0)]
            plane = (ki % s0) * s0 + (kj % s0)
            blk = jnp.pad(w[ki, kj], ((0, cp - cin), (0, co - cout)))
            wg = wg.at[g, plane * cp:(plane + 1) * cp, :].set(blk)
    return tuple(offsets), wg


def _flat_conv2_weights(w_oihw, scale, co):
    """[Cout, Cin, 3, 3] -> (9*co, co), tap-major, bn1 scale folded in."""
    cout, cin, kh, kw = w_oihw.shape
    w = jnp.transpose(w_oihw, (2, 3, 1, 0)) * scale[None, None, None, :]   # (3,3,cin,cout)
    w = w.reshape(kh * kw, cin, cout)
    w = jnp.pad(w, ((0, 0), (0, co - cin), (0, co - cout)))
    return w.reshape(kh * kw * co, co)


def _grouped_wd(wd_oihw, scale, s0, cp, co):
    """1x1 downsample weights placed in the channel block of their parity plane; bn_d scale folded."""
    cout, cin = wd_oihw.shape[:2]
    w = wd_oihw[:, :, 0, 0].T * scale[None, :]                              # (cin, cout)
    plane = (1 % s0) * s0 + (1 % s0)
    wg = jnp.zeros((s0 * s0 * cp, co), jnp.float32)
    wg = wg.at[plane * cp:plane * cp + cin, :cout].set(w)
    return wg


def _fold_bn(gamma, beta, mean, var, eps=1e-5):
    scale = gamma / jnp.sqrt(var + eps)
    bias = beta - mean * scale
    return scale, bias


def _pad_vec(v, n):
    return jnp.pad(v, (0, n - v.shape[0])).reshape(1, n).astype(jnp.float32)


def base_rest_block_downsample(x_nchw, params, stride, *, compute_dtype=jnp.bfloat16):
    s0, s1 = stride
    if s1 != 1:
        # The PyTorch module's residual add only shape-checks when stride[1] == 1
        # (downsample stride == conv1 stride); mirror that constraint explicitly.
        raise NotImplementedError("BaseRestBlock_Downsample requires stride[1] == 1")

    x = jnp.transpose(x_nchw, (0, 2, 3, 1)).astype(jnp.float32)     # NCHW -> NHWC
    N, H, W, Cin = x.shape
    Cout = params["w1"].shape[0]

    Ho = (H - 1) // s0 + 1
    Wo = (W - 1) // s0 + 1
    Cp = _round_up(Cin, 8)                  # sublane-friendly per-plane channel block
    Co = _round_up(Cout, 128)               # lane-dense output / weight columns
    Ha = -(-(H + 2) // s0)
    Wa = -(-(W + 2) // s0)
    Ws = _round_up(max(Wo + 2, Wa), 8)      # flat row stride, sublane-aligned
    Mflat = Ho * Ws
    Lp = _round_up(Ha * Ws + 2, 8)          # flat parity-plane length (+ slack for tap overreach)
    S0i = _round_up(Ws + 1, 8)              # sublane-aligned interior start of the o1 staging
    Lo = _round_up(S0i + Mflat + Ws + 2, 8)
    P2 = s0 * s0
    Kp = P2 * Cp

    # fold BN scales into the conv weights (only bias adds remain in-kernel).
    # NOTE: the PyTorch forward reuses bn1 after conv2; bn2 is intentionally unused.
    s1v, b1v = _fold_bn(*params["bn1"])
    sdv, bdv = _fold_bn(*params["bn_d"])
    bias1 = _pad_vec(b1v, Co)
    biasd = _pad_vec(bdv, Co)

    xc = jnp.pad(x, ((0, 0), (0, 0), (0, 0), (0, Cp - Cin)))
    planes = _build_stacked_parity_planes(xc, s0, Ws, Lp, compute_dtype)   # (N, Lp, Kp)

    offs1, w1g = _grouped_conv1_weights(params["w1"], s1v, s0, Ws, Cp, Co)
    w1g = w1g.astype(compute_dtype)
    w2f = _flat_conv2_weights(params["w2"], s1v, Co).astype(compute_dtype)
    wdg = _grouped_wd(params["wd"], sdv, s0, Cp, Co).astype(compute_dtype)

    res_off = ((1 - 1 % s0) // s0) * (Ws + 1)

    kernel = functools.partial(_resblock_kernel, offs1=offs1, res_off=res_off,
                               ws=Ws, wo=Wo, s_int=S0i)

    out = pl.pallas_call(
        kernel,
        out_shape=jax.ShapeDtypeStruct((N, Mflat, Co), compute_dtype),
        grid=(N,),
        in_specs=[
            pl.BlockSpec((1, Lp, Kp), lambda n: (n, 0, 0)),
            pl.BlockSpec((len(offs1), Kp, Co), lambda n: (0, 0, 0)),
            pl.BlockSpec((9 * Co, Co), lambda n: (0, 0)),
            pl.BlockSpec((Kp, Co), lambda n: (0, 0)),
            pl.BlockSpec((1, Co), lambda n: (0, 0)),
            pl.BlockSpec((1, Co), lambda n: (0, 0)),
        ],
        out_specs=pl.BlockSpec((1, Mflat, Co), lambda n: (n, 0, 0)),
        scratch_shapes=[pltpu.VMEM((Lo, Co), compute_dtype)],
        compiler_params=pltpu.CompilerParams(
            dimension_semantics=("parallel",),   # batch across TensorCores on v7x megacore
            vmem_limit_bytes=_VMEM_LIMIT_BYTES,
        ),
    )(planes, w1g, w2f, wdg, bias1, biasd)

    # drop flat-layout junk columns and lane padding, back to NCHW
    out = out.reshape(N, Ho, Ws, Co)[:, :, :Wo, :Cout]
    return jnp.transpose(out, (0, 3, 1, 2)).astype(x_nchw.dtype)


# ------------------------------ reference (pure JAX) ------------------------------

def _conv_ref(x_nhwc, w_oihw, stride, pad):
    w_hwio = jnp.transpose(w_oihw, (2, 3, 1, 0))
    return lax.conv_general_dilated(
        x_nhwc, w_hwio, (stride, stride), [(pad, pad), (pad, pad)],
        dimension_numbers=("NHWC", "HWIO", "NHWC"),
        precision=lax.Precision.HIGHEST)


def _ref_forward(x_nchw, params, stride):
    s0, s1 = stride
    x = jnp.transpose(x_nchw, (0, 2, 3, 1))
    s1v, b1v = _fold_bn(*params["bn1"])
    sdv, bdv = _fold_bn(*params["bn_d"])
    scale1, bias1 = s1v.reshape(1, -1), b1v.reshape(1, -1)
    scaled, biasd = sdv.reshape(1, -1), bdv.reshape(1, -1)
    residual = _conv_ref(x, params["wd"], s0, 0) * scaled + biasd
    out = jnp.maximum(_conv_ref(x, params["w1"], s0, 1) * scale1 + bias1, 0.0)
    out = _conv_ref(out, params["w2"], s1, 1) * scale1 + bias1   # bn1 reused, bn2 unused (module quirk)
    out = jnp.maximum(out + residual, 0.0)
    return jnp.transpose(out, (0, 3, 1, 2))


# ---------------------------------- main ----------------------------------

if __name__ == "__main__":
    key = jax.random.PRNGKey(0)
    ks = jax.random.split(key, 12)

    in_channels, out_channels, stride = 4, 8, (2, 1)
    x = jax.random.normal(ks[0], (2, in_channels, 16, 16), jnp.float32)

    params = {
        "w1": 0.1 * jax.random.normal(ks[1], (out_channels, in_channels, 3, 3), jnp.float32),
        "w2": 0.1 * jax.random.normal(ks[2], (out_channels, out_channels, 3, 3), jnp.float32),
        "wd": 0.1 * jax.random.normal(ks[3], (out_channels, in_channels, 1, 1), jnp.float32),
        # bn = (gamma, beta, running_mean, running_var)
        "bn1": (jax.random.uniform(ks[4], (out_channels,), jnp.float32, 0.5, 1.5),
                0.1 * jax.random.normal(ks[5], (out_channels,), jnp.float32),
                0.1 * jax.random.normal(ks[6], (out_channels,), jnp.float32),
                jax.random.uniform(ks[7], (out_channels,), jnp.float32, 0.5, 1.5)),
        # bn2 is created by the module but unused in forward (kept for shape fidelity)
        "bn2": (jnp.ones((out_channels,), jnp.float32),
                jnp.zeros((out_channels,), jnp.float32),
                jnp.zeros((out_channels,), jnp.float32),
                jnp.ones((out_channels,), jnp.float32)),
        "bn_d": (jax.random.uniform(ks[8], (out_channels,), jnp.float32, 0.5, 1.5),
                 0.1 * jax.random.normal(ks[9], (out_channels,), jnp.float32),
                 0.1 * jax.random.normal(ks[10], (out_channels,), jnp.float32),
                 jax.random.uniform(ks[11], (out_channels,), jnp.float32, 0.5, 1.5)),
    }

    ref = jax.block_until_ready(_ref_forward(x, params, stride))

    # strict correctness check in f32
    out_f32 = jax.block_until_ready(
        base_rest_block_downsample(x, params, stride, compute_dtype=jnp.float32))
    assert out_f32.shape == (2, out_channels, 8, 8), out_f32.shape
    err32 = float(jnp.max(jnp.abs(out_f32 - ref)))
    assert err32 < 2e-4, err32

    # fast path: bf16 planes/staging/output + bf16 MXU matmuls with f32 accumulation
    out_bf16 = jax.block_until_ready(
        base_rest_block_downsample(x, params, stride, compute_dtype=jnp.bfloat16))
    err16 = float(jnp.max(jnp.abs(out_bf16 - ref)))
    assert err16 < 2e-1, err16

    print("KERNEL_OK")
</pallas_src>

<mosaic_0001>
module attributes {stable_mosaic.version = 11 : i64} {
  func.func @_resblock_kernel(%arg0: i32, %arg1: memref<1x152x32xf32, #tpu.memory_space<vmem>>, %arg2: memref<4x32x128xf32, #tpu.memory_space<vmem>>, %arg3: memref<1152x128xf32, #tpu.memory_space<vmem>>, %arg4: memref<32x128xf32, #tpu.memory_space<vmem>>, %arg5: memref<1x128xf32, #tpu.memory_space<vmem>>, %arg6: memref<1x128xf32, #tpu.memory_space<vmem>>, %arg7: memref<1x128x128xf32, #tpu.memory_space<vmem>>, %arg8: memref<176x128xf32, #tpu.memory_space<vmem>>) attributes {dimension_semantics = [#tpu.dimension_semantics<parallel>], iteration_bounds = array<i64: 2>, scalar_prefetch = 0 : i64, scratch_operands = 1 : i64, tpu.core_type = #tpu.core_type<tc>, window_params = [{transform_indices = @transform_0, window_bounds = array<i64: 1, 152, 32>}, {pipeline_mode = #tpu.pipeline_mode<synchronous>, transform_indices = @transform_1, window_bounds = array<i64: 4, 32, 128>}, {pipeline_mode = #tpu.pipeline_mode<synchronous>, transform_indices = @transform_2, window_bounds = array<i64: 1152, 128>}, {pipeline_mode = #tpu.pipeline_mode<synchronous>, transform_indices = @transform_3, window_bounds = array<i64: 32, 128>}, {pipeline_mode = #tpu.pipeline_mode<synchronous>, transform_indices = @transform_4, window_bounds = array<i64: 1, 128>}, {pipeline_mode = #tpu.pipeline_mode<synchronous>, transform_indices = @transform_5, window_bounds = array<i64: 1, 128>}, {transform_indices = @transform_6, window_bounds = array<i64: 1, 128, 128>}]} {
    %c0 = arith.constant 0 : index
    %c0_0 = arith.constant 0 : index
    %c0_1 = arith.constant 0 : index
    %0 = vector.load %arg1[%c0, %c0_0, %c0_1] : memref<1x152x32xf32, #tpu.memory_space<vmem>>, vector<1x128x32xf32>
    %1 = vector.shape_cast %0 : vector<1x128x32xf32> to vector<128x32xf32>
    %c0_2 = arith.constant 0 : index
    %c0_3 = arith.constant 0 : index
    %c0_4 = arith.constant 0 : index
    %2 = vector.load %arg2[%c0_2, %c0_3, %c0_4] : memref<4x32x128xf32, #tpu.memory_space<vmem>>, vector<1x32x128xf32>
    %3 = vector.shape_cast %2 : vector<1x32x128xf32> to vector<32x128xf32>
    %cst = arith.constant dense<0.000000e+00> : vector<128x128xf32>
    %4 = tpu.matmul %1, %3, %cst {dimension_numbers = #tpu.dot_dimension_numbers<[1], [0], [0], [1], [0, 0, 1, 1], [], []>} : vector<128x32xf32>, vector<32x128xf32>, vector<128x128xf32> -> vector<128x128xf32>
    %c0_5 = arith.constant 0 : index
    %c1 = arith.constant 1 : index
    %c0_6 = arith.constant 0 : index
    %5 = vector.load %arg1[%c0_5, %c1, %c0_6] : memref<1x152x32xf32, #tpu.memory_space<vmem>>, vector<1x128x32xf32>
    %6 = vector.shape_cast %5 : vector<1x128x32xf32> to vector<128x32xf32>
    %c1_7 = arith.constant 1 : index
    %c0_8 = arith.constant 0 : index
    %c0_9 = arith.constant 0 : index
    %7 = vector.load %arg2[%c1_7, %c0_8, %c0_9] : memref<4x32x128xf32, #tpu.memory_space<vmem>>, vector<1x32x128xf32>
    %8 = vector.shape_cast %7 : vector<1x32x128xf32> to vector<32x128xf32>
    %cst_10 = arith.constant dense<0.000000e+00> : vector<128x128xf32>
    %9 = tpu.matmul %6, %8, %cst_10 {dimension_numbers = #tpu.dot_dimension_numbers<[1], [0], [0], [1], [0, 0, 1, 1], [], []>} : vector<128x32xf32>, vector<32x128xf32>, vector<128x128xf32> -> vector<128x128xf32>
    %10 = arith.addf %4, %9 : vector<128x128xf32>
    %c0_11 = arith.constant 0 : index
    %c16 = arith.constant 16 : index
    %c0_12 = arith.constant 0 : index
    %11 = vector.load %arg1[%c0_11, %c16, %c0_12] : memref<1x152x32xf32, #tpu.memory_space<vmem>>, vector<1x128x32xf32>
    %12 = vector.shape_cast %11 : vector<1x128x32xf32> to vector<128x32xf32>
    %c2 = arith.constant 2 : index
    %c0_13 = arith.constant 0 : index
    %c0_14 = arith.constant 0 : index
    %13 = vector.load %arg2[%c2, %c0_13, %c0_14] : memref<4x32x128xf32, #tpu.memory_space<vmem>>, vector<1x32x128xf32>
    %14 = vector.shape_cast %13 : vector<1x32x128xf32> to vector<32x128xf32>
    %cst_15 = arith.constant dense<0.000000e+00> : vector<128x128xf32>
    %15 = tpu.matmul %12, %14, %cst_15 {dimension_numbers = #tpu.dot_dimension_numbers<[1], [0], [0], [1], [0, 0, 1, 1], [], []>} : vector<128x32xf32>, vector<32x128xf32>, vector<128x128xf32> -> vector<128x128xf32>
    %16 = arith.addf %10, %15 : vector<128x128xf32>
    %c0_16 = arith.constant 0 : index
    %c17 = arith.constant 17 : index
    %c0_17 = arith.constant 0 : index
    %17 = vector.load %arg1[%c0_16, %c17, %c0_17] : memref<1x152x32xf32, #tpu.memory_space<vmem>>, vector<1x128x32xf32>
    %18 = vector.shape_cast %17 : vector<1x128x32xf32> to vector<128x32xf32>
    %c3 = arith.constant 3 : index
    %c0_18 = arith.constant 0 : index
    %c0_19 = arith.constant 0 : index
    %19 = vector.load %arg2[%c3, %c0_18, %c0_19] : memref<4x32x128xf32, #tpu.memory_space<vmem>>, vector<1x32x128xf32>
    %20 = vector.shape_cast %19 : vector<1x32x128xf32> to vector<32x128xf32>
    %cst_20 = arith.constant dense<0.000000e+00> : vector<128x128xf32>
    %21 = tpu.matmul %18, %20, %cst_20 {dimension_numbers = #tpu.dot_dimension_numbers<[1], [0], [0], [1], [0, 0, 1, 1], [], []>} : vector<128x32xf32>, vector<32x128xf32>, vector<128x128xf32> -> vector<128x128xf32>
    %22 = arith.addf %16, %21 : vector<128x128xf32>
    %23 = tpu.iota {dimensions = array<i32: 0>} : vector<128x1xi32>
    %c16_i32 = arith.constant 16 : i32
    %c0_i32 = arith.constant 0 : i32
    %24 = arith.cmpi eq, %c16_i32, %c0_i32 : i32
    %c1_i32 = arith.constant 1 : i32
    %25 = arith.select %24, %c1_i32, %c16_i32 : i32
    %26 = vector.broadcast %25 : i32 to vector<128x1xi32>
    %27 = arith.remsi %23, %26 : vector<128x1xi32>
    %c0_i32_21 = arith.constant 0 : i32
    %28 = vector.broadcast %c0_i32_21 : i32 to vector<128x1xi32>
    %29 = arith.cmpi ne, %27, %28 : vector<128x1xi32>
    %c0_i32_22 = arith.constant 0 : i32
    %30 = vector.broadcast %c0_i32_22 : i32 to vector<128x1xi32>
    %31 = arith.cmpi slt, %27, %30 : vector<128x1xi32>
    %c0_i32_23 = arith.constant 0 : i32
    %32 = arith.cmpi slt, %25, %c0_i32_23 : i32
    %33 = vector.broadcast %32 : i1 to vector<128x1xi1>
    %34 = vector.broadcast %33 : vector<128x1xi1> to vector<128x1xi1>
    %35 = arith.xori %31, %34 : vector<128x1xi1>
    %36 = arith.andi %35, %29 : vector<128x1xi1>
    %37 = vector.broadcast %25 : i32 to vector<128x1xi32>
    %38 = arith.addi %27, %37 : vector<128x1xi32>
    %39 = arith.select %36, %38, %27 : vector<128x1xi1>, vector<128x1xi32>
    %c8_i32 = arith.constant 8 : i32
    %40 = vector.broadcast %c8_i32 : i32 to vector<128x1xi32>
    %41 = arith.cmpi slt, %39, %40 : vector<128x1xi32>
    %c0_24 = arith.constant 0 : index
    %c0_25 = arith.constant 0 : index
    %42 = vector.load %arg5[%c0_24, %c0_25] : memref<1x128xf32, #tpu.memory_space<vmem>>, vector<1x128xf32>
    %43 = vector.broadcast %42 : vector<1x128xf32> to vector<128x128xf32>
    %44 = arith.addf %22, %43 : vector<128x128xf32>
    %cst_26 = arith.constant 0.000000e+00 : f32
    %45 = vector.broadcast %cst_26 : f32 to vector<128x128xf32>
    %46 = arith.maximumf %44, %45 : vector<128x128xf32>
    %cst_27 = arith.constant 0.000000e+00 : f32
    %47 = vector.shape_cast %41 : vector<128x1xi1> to vector<128x1xi1>
    %48 = vector.broadcast %47 : vector<128x1xi1> to vector<128x128xi1>
    %49 = vector.broadcast %cst_27 : f32 to vector<128x128xf32>
    %50 = arith.select %48, %46, %49 : vector<128x128xi1>, vector<128x128xf32>
    %cst_28 = arith.constant 0.000000e+00 : f32
    %51 = vector.broadcast %cst_28 : f32 to vector<24x128xf32>
    %c0_29 = arith.constant 0 : index
    %c0_30 = arith.constant 0 : index
    %52 = vector.load %arg8[%c0_29, %c0_30] : memref<176x128xf32, #tpu.memory_space<vmem>>, vector<24x128xf32>
    tpu.vector_store %arg8[%c0_29, %c0_30], %51 {strides = array<i32>} : memref<176x128xf32, #tpu.memory_space<vmem>>, vector<24x128xf32>,
    %cst_31 = arith.constant 0.000000e+00 : f32
    %53 = vector.broadcast %cst_31 : f32 to vector<24x128xf32>
    %c152 = arith.constant 152 : index
    %c0_32 = arith.constant 0 : index
    %54 = vector.load %arg8[%c152, %c0_32] : memref<176x128xf32, #tpu.memory_space<vmem>>, vector<24x128xf32>
    tpu.vector_store %arg8[%c152, %c0_32], %53 {strides = array<i32>} : memref<176x128xf32, #tpu.memory_space<vmem>>, vector<24x128xf32>,
    %c24 = arith.constant 24 : index
    %c0_33 = arith.constant 0 : index
    %55 = vector.load %arg8[%c24, %c0_33] : memref<176x128xf32, #tpu.memory_space<vmem>>, vector<128x128xf32>
    tpu.vector_store %arg8[%c24, %c0_33], %50 {strides = array<i32>} : memref<176x128xf32, #tpu.memory_space<vmem>>, vector<128x128xf32>,
    %c7 = arith.constant 7 : index
    %c0_34 = arith.constant 0 : index
    %56 = vector.load %arg8[%c7, %c0_34] : memref<176x128xf32, #tpu.memory_space<vmem>>, vector<128x128xf32>
    %c8 = arith.constant 8 : index
    %c0_35 = arith.constant 0 : index
    %57 = vector.load %arg8[%c8, %c0_35] : memref<176x128xf32, #tpu.memory_space<vmem>>, vector<128x128xf32>
    %58 = tpu.concatenate %56, %57 in 1 : vector<128x128xf32>, vector<128x128xf32> -> vector<128x256xf32>
    %c0_36 = arith.constant 0 : index
    %c0_37 = arith.constant 0 : index
    %59 = vector.load %arg3[%c0_36, %c0_37] : memref<1152x128xf32, #tpu.memory_space<vmem>>, vector<256x128xf32>
    %cst_38 = arith.constant dense<0.000000e+00> : vector<128x128xf32>
    %60 = tpu.matmul %58, %59, %cst_38 {dimension_numbers = #tpu.dot_dimension_numbers<[1], [0], [0], [1], [0, 0, 1, 1], [], []>} : vector<128x256xf32>, vector<256x128xf32>, vector<128x128xf32> -> vector<128x128xf32>
    %c9 = arith.constant 9 : index
    %c0_39 = arith.constant 0 : index
    %61 = vector.load %arg8[%c9, %c0_39] : memref<176x128xf32, #tpu.memory_space<vmem>>, vector<128x128xf32>
    %c23 = arith.constant 23 : index
    %c0_40 = arith.constant 0 : index
    %62 = vector.load %arg8[%c23, %c0_40] : memref<176x128xf32, #tpu.memory_space<vmem>>, vector<128x128xf32>
    %63 = tpu.concatenate %61, %62 in 1 : vector<128x128xf32>, vector<128x128xf32> -> vector<128x256xf32>
    %c256 = arith.constant 256 : index
    %c0_41 = arith.constant 0 : index
    %64 = vector.load %arg3[%c256, %c0_41] : memref<1152x128xf32, #tpu.memory_space<vmem>>, vector<256x128xf32>
    %cst_42 = arith.constant dense<0.000000e+00> : vector<128x128xf32>
    %65 = tpu.matmul %63, %64, %cst_42 {dimension_numbers = #tpu.dot_dimension_numbers<[1], [0], [0], [1], [0, 0, 1, 1], [], []>} : vector<128x256xf32>, vector<256x128xf32>, vector<128x128xf32> -> vector<128x128xf32>
    %66 = arith.addf %60, %65 : vector<128x128xf32>
    %c24_43 = arith.constant 24 : index
    %c0_44 = arith.constant 0 : index
    %67 = vector.load %arg8[%c24_43, %c0_44] : memref<176x128xf32, #tpu.memory_space<vmem>>, vector<128x128xf32>
    %c25 = arith.constant 25 : index
    %c0_45 = arith.constant 0 : index
    %68 = vector.load %arg8[%c25, %c0_45] : memref<176x128xf32, #tpu.memory_space<vmem>>, vector<128x128xf32>
    %69 = tpu.concatenate %67, %68 in 1 : vector<128x128xf32>, vector<128x128xf32> -> vector<128x256xf32>
    %c512 = arith.constant 512 : index
    %c0_46 = arith.constant 0 : index
    %70 = vector.load %arg3[%c512, %c0_46] : memref<1152x128xf32, #tpu.memory_space<vmem>>, vector<256x128xf32>
    %cst_47 = arith.constant dense<0.000000e+00> : vector<128x128xf32>
    %71 = tpu.matmul %69, %70, %cst_47 {dimension_numbers = #tpu.dot_dimension_numbers<[1], [0], [0], [1], [0, 0, 1, 1], [], []>} : vector<128x256xf32>, vector<256x128xf32>, vector<128x128xf32> -> vector<128x128xf32>
    %72 = arith.addf %66, %71 : vector<128x128xf32>
    %c39 = arith.constant 39 : index
    %c0_48 = arith.constant 0 : index
    %73 = vector.load %arg8[%c39, %c0_48] : memref<176x128xf32, #tpu.memory_space<vmem>>, vector<128x128xf32>
    %c40 = arith.constant 40 : index
    %c0_49 = arith.constant 0 : index
    %74 = vector.load %arg8[%c40, %c0_49] : memref<176x128xf32, #tpu.memory_space<vmem>>, vector<128x128xf32>
    %75 = tpu.concatenate %73, %74 in 1 : vector<128x128xf32>, vector<128x128xf32> -> vector<128x256xf32>
    %c768 = arith.constant 768 : index
    %c0_50 = arith.constant 0 : index
    %76 = vector.load %arg3[%c768, %c0_50] : memref<1152x128xf32, #tpu.memory_space<vmem>>, vector<256x128xf32>
    %cst_51 = arith.constant dense<0.000000e+00> : vector<128x128xf32>
    %77 = tpu.matmul %75, %76, %cst_51 {dimension_numbers = #tpu.dot_dimension_numbers<[1], [0], [0], [1], [0, 0, 1, 1], [], []>} : vector<128x256xf32>, vector<256x128xf32>, vector<128x128xf32> -> vector<128x128xf32>
    %78 = arith.addf %72, %77 : vector<128x128xf32>
    %c41 = arith.constant 41 : index
    %c0_52 = arith.constant 0 : index
    %79 = vector.load %arg8[%c41, %c0_52] : memref<176x128xf32, #tpu.memory_space<vmem>>, vector<128x128xf32>
    %c1024 = arith.constant 1024 : index
    %c0_53 = arith.constant 0 : index
    %80 = vector.load %arg3[%c1024, %c0_53] : memref<1152x128xf32, #tpu.memory_space<vmem>>, vector<128x128xf32>
    %cst_54 = arith.constant dense<0.000000e+00> : vector<128x128xf32>
    %81 = tpu.matmul %79, %80, %cst_54 {dimension_numbers = #tpu.dot_dimension_numbers<[1], [0], [0], [1], [0, 0, 1, 1], [], []>} : vector<128x128xf32>, vector<128x128xf32>, vector<128x128xf32> -> vector<128x128xf32>
    %82 = arith.addf %78, %81 : vector<128x128xf32>
    %c0_55 = arith.constant 0 : index
    %c0_56 = arith.constant 0 : index
    %83 = vector.load %arg5[%c0_55, %c0_56] : memref<1x128xf32, #tpu.memory_space<vmem>>, vector<1x128xf32>
    %84 = vector.broadcast %83 : vector<1x128xf32> to vector<128x128xf32>
    %85 = arith.addf %82, %84 : vector<128x128xf32>
    %c0_57 = arith.constant 0 : index
    %c0_58 = arith.constant 0 : index
    %c0_59 = arith.constant 0 : index
    %86 = vector.load %arg1[%c0_57, %c0_58, %c0_59] : memref<1x152x32xf32, #tpu.memory_space<vmem>>, vector<1x128x32xf32>
    %87 = vector.shape_cast %86 : vector<1x128x32xf32> to vector<128x32xf32>
    %c0_60 = arith.constant 0 : index
    %c0_61 = arith.constant 0 : index
    %88 = vector.load %arg4[%c0_60, %c0_61] : memref<32x128xf32, #tpu.memory_space<vmem>>, vector<32x128xf32>
    %cst_62 = arith.constant dense<0.000000e+00> : vector<128x128xf32>
    %89 = tpu.matmul %87, %88, %cst_62 {dimension_numbers = #tpu.dot_dimension_numbers<[1], [0], [0], [1], [0, 0, 1, 1], [], []>} : vector<128x32xf32>, vector<32x128xf32>, vector<128x128xf32> -> vector<128x128xf32>
    %c0_63 = arith.constant 0 : index
    %c0_64 = arith.constant 0 : index
    %90 = vector.load %arg6[%c0_63, %c0_64] : memref<1x128xf32, #tpu.memory_space<vmem>>, vector<1x128xf32>
    %91 = vector.broadcast %90 : vector<1x128xf32> to vector<128x128xf32>
    %92 = arith.addf %89, %91 : vector<128x128xf32>
    %93 = arith.addf %85, %92 : vector<128x128xf32>
    %cst_65 = arith.constant 0.000000e+00 : f32
    %94 = vector.broadcast %cst_65 : f32 to vector<128x128xf32>
    %95 = arith.maximumf %93, %94 : vector<128x128xf32>
    %c0_66 = arith.constant 0 : index
    %c0_67 = arith.constant 0 : index
    %c0_68 = arith.constant 0 : index
    %96 = vector.load %arg7[%c0_66, %c0_67, %c0_68] : memref<1x128x128xf32, #tpu.memory_space<vmem>>, vector<1x128x128xf32>
    %97 = vector.shape_cast %96 : vector<1x128x128xf32> to vector<128x128xf32>
    %98 = vector.shape_cast %95 : vector<128x128xf32> to vector<1x128x128xf32>
    tpu.vector_store %arg7[%c0_66, %c0_67, %c0_68], %98 {strides = array<i32>} : memref<1x128x128xf32, #tpu.memory_space<vmem>>, vector<1x128x128xf32>,
    return
  }
  func.func @transform_0(%arg0: i32) -> (i32, i32, i32) {
    %c0_i32 = arith.constant 0 : i32
    %c0_i32_0 = arith.constant 0 : i32
    %c0_i32_1 = arith.constant 0 : i32
    return %arg0, %c0_i32, %c0_i32_0 : i32, i32, i32
  }
  func.func @transform_1(%arg0: i32) -> (i32, i32, i32) {
    %c0_i32 = arith.constant 0 : i32
    %c0_i32_0 = arith.constant 0 : i32
    %c0_i32_1 = arith.constant 0 : i32
    %c0_i32_2 = arith.constant 0 : i32
    return %c0_i32, %c0_i32_0, %c0_i32_1 : i32, i32, i32
  }
  func.func @transform_2(%arg0: i32) -> (i32, i32) {
    %c0_i32 = arith.constant 0 : i32
    %c0_i32_0 = arith.constant 0 : i32
    %c0_i32_1 = arith.constant 0 : i32
    return %c0_i32, %c0_i32_0 : i32, i32
  }
  func.func @transform_3(%arg0: i32) -> (i32, i32) {
    %c0_i32 = arith.constant 0 : i32
    %c0_i32_0 = arith.constant 0 : i32
    %c0_i32_1 = arith.constant 0 : i32
    return %c0_i32, %c0_i32_0 : i32, i32
  }
  func.func @transform_4(%arg0: i32) -> (i32, i32) {
    %c0_i32 = arith.constant 0 : i32
    %c0_i32_0 = arith.constant 0 : i32
    %c0_i32_1 = arith.constant 0 : i32
    return %c0_i32, %c0_i32_0 : i32, i32
  }
  func.func @transform_5(%arg0: i32) -> (i32, i32) {
    %c0_i32 = arith.constant 0 : i32
    %c0_i32_0 = arith.constant 0 : i32
    %c0_i32_1 = arith.constant 0 : i32
    return %c0_i32, %c0_i32_0 : i32, i32
  }
  func.func @transform_6(%arg0: i32) -> (i32, i32, i32) {
    %c0_i32 = arith.constant 0 : i32
    %c0_i32_0 = arith.constant 0 : i32
    %c0_i32_1 = arith.constant 0 : i32
    return %arg0, %c0_i32, %c0_i32_0 : i32, i32, i32
  }
}

</mosaic_0001>

<bundles_post_ra>
// kernel: tpu_custom_call.1
= control target key start
LH: loop header
LB: loop body
LE: loop exit
PB: predicated region body
PF: predicated region fallthrough
CT: control target
= control target key end

     0   :  { %11 = vsyncpa [#allocation4], 0  ;;  %s4943_s0 = inlined_call_operand.vmem [shape: f32[2,152,32], index: 0, kind: input, shape index: {}]   ;;  %s4944_s1 = inlined_call_operand.vmem [shape: f32[4,32,128], index: 1, kind: input, shape index: {}]   ;;  %s4945_s2 = inlined_call_operand.hbm [shape: f32[1152,128], index: 2, kind: input, shape index: {}]   ;;  %s4946_s3 = inlined_call_operand.vmem [shape: f32[32,128], index: 3, kind: input, shape index: {}]   ;;  %s4947_s4 = inlined_call_operand.vmem [shape: f32[1,128], index: 4, kind: input, shape index: {}]   ;;  %s4948_s5 = inlined_call_operand.vmem [shape: f32[1,128], index: 5, kind: input, shape index: {}]   ;;  %s4949_s6 = inlined_call_operand.hbm [shape: f32[2,128,128], index: 6, kind: output, shape index: {}]  }
   0x1   :  { %12 = vsyncpa [#allocation5], 0 }
   0x2   :  { %14 = vsyncpa [#allocation5 + $0x1], 0  ;;  %s4149_s21 = smov 0   ;;  %s4151_s22 = smov 0  }
   0x3   :  { %s4153_s23 = smov 0   ;;  %s4155_s24 = smov 0  }
   0x4 LB: > { %s4170_s25 = sadd.s32 4294967295, %s4105_s24   ;;  %s2913_s26 = sadd.s32 4294967294, %s4105_s24   ;;  %s4105_s24 = sphi %s4155_s24, %s4965_s24   ;;  %s4101_s23 = sphi %s4153_s23, %s4964_s23   ;;  %s4097_s22 = sphi %s4151_s22, %s4963_s22   ;;  %s4093_s21 = sphi %s4149_s21, %s4962_s21  }
   0x5   : > { %s4174_s27 = sadd.s32 1, %s4105_s24   ;;  %s158_s28 = sadd.s32 1, %s4101_s23 }
   0x6   : > { %s155_s29 = ssub.s32 %s4105_s24, %s4174_s27  ;;  %p168_p0 = scmp.ne.s32.totalorder %s4101_s23, %s4097_s22 }
   0x7   : > { %p156_p1 = scmp.eq.s32.totalorder %s155_s29, 0  ;;  %p169_p2 = scmp.eq.s32.totalorder %s4170_s25, 1 }
   0x8   : > { %p174_p3 = scmp.ne.s32.totalorder %s4097_s22, %s4093_s21  ;;  %p175_p4 = scmp.eq.s32.totalorder %s2913_s26, 1 }
   0x9   : > { %s4185_s30 = scalar_select %p156_p1, %s4101_s23, %s158_s28  }
   0xa   : > { %p4187_p5 = por %p169_p2, %p168_p0  ;;  %p4191_p6 = por %p175_p4, %p174_p3 }
   0xb   : > { %p2914_p7 = scmp.ge.s32.totalorder %s4105_s24, 1  ;;  %p182_p8 = scmp.lt.s32.totalorder %s4105_s24, 3 }
   0xc   : > { %s4953_s7 = scalar_select %p4187_p5, 1, 0 }
   0xd   : > { %s4954_s8 = scalar_select %p4191_p6, 1, 0 }
   0xe   : > { %p4950_p9 = scmp.eq.s32.totalorder %s4170_s25, 0  ;;  %p4198_p10 = pnand %p2914_p7, %p182_p8 }
   0xf   : > { %s4107_s10 = smov [#allocation3]   ;;  %s4011_s15 = scalar_lea.hbm %s4945_s2, 18432 }
  0x10   : > { %s4955_s9 = scalar_select %p4198_p10, 1, 0 }
  0x11   : > { %s197_s11 = sshll.u32 %s4107_s10, 4  ;;  %p3961_p11 = pneg %p4198_p10  ;;  %s198_s11 = int_to_ptr.vmem [resolvable:$true] %s197_s11 }
  0x12   : > { %p4012_p13 = scmp.ne.s32.totalorder %s4945_s2, %s4011_s15  ;;  %p4018_p3 = scmp.lt.u32.totalorder %s4011_s15, %s4945_s2 }
  0x13   : > { %p4206_p12 = pnand %p4950_p9, %p3961_p11 }
  0x15   : > { %p4013_p0 = pneg %p4206_p12 }
  0x17   : > { %p4014_p1 = pnand %p4013_p0, %p4012_p13 }
  0x19   : > { %p4015_p2 = pneg %p4014_p1 }
  0x1b   : > { %p4020_p4 = pnand %p4018_p3, %p4015_p2 }
  0x1d   : > { %4023 = shalt.err (!%p4020_p4)
}
  0x1e   : > { %s4024_s20 = scalar_lea.vmem %s198_s11, 18432  ;;  %p4032_p9 = scmp.lt.s32.totalorder %s198_s11, %s198_s11 }
  0x1f   : > { %p4025_p7 = scmp.ne.s32.totalorder %s198_s11, %s4024_s20  ;;  %p4033_p6 = scmp.lt.s32.totalorder %s4024_s20, %s4024_s20 }
  0x21   : > { %p4027_p8 = pnand %p4025_p7, %p4013_p0  ;;  %p4034_p5 = por %p4033_p6, %p4032_p9 }
  0x23   : > { %p4028_p11 = pneg %p4027_p8 }
  0x25   : > { %p4035_p10 = pnand %p4034_p5, %p4028_p11 }
  0x27   : > { %4038 = shalt.err (!%p4035_p10)
}
  0x28   : > { %s4108_s26 = smov 128   ;;  %s4109_s28 = smov 8  }
  0x29   : > { %3964 = dma.hbm_to_vmem [thread:$0]  (!%p4206_p12), %s4945_s2, 18432, %s198_s11, [#allocation4], %s4108_s26, %s4108_s26, %s4109_s28  }
  0x2a   : > { %p4957_p13 = scmp.ne.s32.totalorder %s4955_s9, 0 }
  0x2b   : > { %p4958_p1 = scmp.eq.s32.totalorder (!%p4957_p13), %s4170_s25, 0 }
  0x2c   : > { %230 = sbr.rel (%p4957_p13) target bundleno = 775 (0x307), region = 44 }
  0x33   : > { %4084 = dma.done.wait (%p4958_p1), [#allocation4], 18432   ;;  %p4959_p0 = pmov %p4958_p1 }
  0x34   : > { %p260_p5 = scmp.lt.s32.totalorder %s4170_s25, 1  ;;  %vm306_vm0 = vcmask 261120   ;;  %v2921_v0 = vld [vmem:[%s4944_s1 + $0x20] sm:$0xff]  ;;  %v2922_v1 = vld [vmem:[%s4944_s1 + $0x28] sm:$0xff]  ;;  %v2923_v2 = vld [vmem:[%s4944_s1 + $0x30] sm:$0xff]  ;;  %s257_s11 = sand.u32 1, %s4097_s22  }
  0x35   : > { %4086 = vsyncadd (%p4959_p0), [#allocation4], 4294948864  ;;  %v3690_v3 = vpack.c.bf16 %v2922_v1, %v2921_v0  ;;  %v2924_v4 = vld [vmem:[%s4944_s1 + $0x38] sm:$0xff]  ;;  %v281_v7 = vld [vmem:[%s4944_s1] sm:$0xff]  ;;  %s2919_s17 = sshll.u32 %s257_s11, 7  ;;  %s3021_s26 = sshll.u32 %s4170_s25, 11 }
  0x36   : > { %s261_s13 = scalar_select %p260_p5, %s4170_s25, 1  ;;  %v3694_v6 = vpack.c.bf16 %v2924_v4, %v2923_v2  ;;  %v282_v8 = vld [vmem:[%s4944_s1 + $0x8] sm:$0xff]  ;;  %v283_v10 = vld [vmem:[%s4944_s1 + $0x10] sm:$0xff]  ;;  %v284_v11 = vld [vmem:[%s4944_s1 + $0x18] sm:$0xff] }
  0x37   : > { %3691 = vmatprep.subr.bf16.mxu1 %v3690_v3  ;;  %v3698_v9 = vpack.c.bf16 %v282_v8, %v281_v7  ;;  %v2957_v12 = vld [vmem:[%s4944_s1 + $0x40] sm:$0xff]  ;;  %v2958_v13 = vld [vmem:[%s4944_s1 + $0x48] sm:$0xff]  ;;  %v2959_v16 = vld [vmem:[%s4944_s1 + $0x50] sm:$0xff]  ;;  %v3702_v18 = vpack.c.bf16 %v284_v11, %v283_v10  ;;  %s4841_s20 = scalar_lea.vmem [#allocation6], %s2919_s17  ;;  %s4902_s25 = scalar_lea.sflag [#allocation5], %s257_s11 }
  0x38   : > { %s3954_s14 = smul.u32 152, %s261_s13  ;;  %3693 = vmatpush3.bf16.msra.mxu1 %v3690_v3  ;;  %v3706_v15 = vpack.c.bf16 %v2958_v13, %v2957_v12  ;;  %v2960_v19 = vld [vmem:[%s4944_s1 + $0x58] sm:$0xff]  ;;  %v2977_v21 = vld [vmem:[%s4944_s1 + $0x60] sm:$0xff]  ;;  %v2978_v22 = vld [vmem:[%s4944_s1 + $0x68] sm:$0xff]  ;;  %s2839_s28 = sshll.u32 %s4841_s20, 4  ;;  %s4896_s28 = int_to_ptr.vmem [resolvable:$true] %s2839_s28 }
  0x39   : > { %3695 = vmatprep.subr.bf16.mxu1 %v3694_v6  ;;  %v3710_v20 = vpack.c.bf16 %v2960_v19, %v2959_v16  ;;  %v4299_v26 = vpack.c.bf16 %v2978_v22, %v2977_v21  ;;  %v2979_v51 = vld [vmem:[%s4944_s1 + $0x70] sm:$0xff]  ;;  %v2980_v52 = vld [vmem:[%s4944_s1 + $0x78] sm:$0xff]  ;;  %v1537_v2 = vld [vmem:[#allocation3 + $0x90] sm:$0xff]  ;;  %s4894_s13 = scalar_lea.hbm %s4949_s6, %s3021_s26  ;;  %p4960_p9 = scmp.ne.s32.totalorder %s4953_s7, 0 }
  0x3a   : > { %s4237_s16 = scalar_lea.vmem %s4943_s0, %s3954_s14  ;;  %3707 = vmatprep.subr.bf16.mxu0 %v3706_v15  ;;  %v3718_v56 = vpack.c.bf16 %v2980_v52, %v2979_v51  ;;  %v1535_v60 = vld [vmem:[#allocation3 + $0x80] sm:$0xff]  ;;  %v1536_v61 = vld [vmem:[#allocation3 + $0x88] sm:$0xff]  ;;  %v1538_v3 = vld [vmem:[#allocation3 + $0x98] sm:$0xff]  ;;  %s4039_s14 = scalar_lea.vmem %s4896_s28, 2048 }
  0x3b   : > { %v285_v5 = vld [vmem:[%s4237_s16 + $0x1] sm:$0xff]  ;;  %v286_v14 = vld [vmem:[%s4237_s16 + $0x9] sm:$0xff]  ;;  %v4276_v17 = vld [vmem:[%s4237_s16 + $0x11] sm:$0xff]  ;;  %3709 = vmatpush3.bf16.msra.mxu0 %v3706_v15  ;;  %v3754_v62 = vpack.c.bf16 %v1536_v61, %v1535_v60  ;;  %v3758_v4 = vpack.c.bf16 %v1538_v3, %v1537_v2  ;;  %v4110_v61 = vmov 0.0   ;;  %p4040_p6 = scmp.ne.s32.totalorder %s4896_s28, %s4039_s14  ;;  %s4111_s15 = smov [#allocation6]  }
  0x3c   : > { %3482 = vmatprep.mubr.msk.f32.mxu1 %vm306_vm0, %v285_v5  ;;  %3697 = vmatpush3.bf16.msra.mxu1 %v3694_v6  ;;  %v4289_v23 = vld [vmem:[%s4237_s16 + $0x10] sm:$0xff]  ;;  %v4294_v24 = vld [vmem:[%s4237_s16 + $0x19] sm:$0xff]  ;;  %v4297_v25 = vld [vmem:[%s4237_s16 + $0x21] sm:$0xff]  ;;  %1466 = vst [vmem:[#allocation2 + $0x8] sm:$0xff] %v4110_v61  ;;  %s4043_s12 = sshll.u32 %s4111_s15, 4  ;;  %s4044_s12 = int_to_ptr.vmem [resolvable:$false] %s4043_s12 }
  0x3d   : > { %3699 = vmatprep.subr.bf16.mxu1 %v3698_v9  ;;  %3711 = vmatprep.subr.bf16.mxu0 %v3710_v20  ;;  %v4306_v27 = vld [vmem:[%s4237_s16 + $0x18] sm:$0xff]  ;;  %v4311_v28 = vld [vmem:[%s4237_s16 + $0x29] sm:$0xff]  ;;  %v695_v29 = vld [vmem:[%s4237_s16 + $0x20] sm:$0xff]  ;;  %1465 = vst [vmem:[#allocation2] sm:$0xff] %v4110_v61  ;;  %p4041_p10 = pnand %p4040_p6, %p4960_p9  ;;  %p4046_p2 = scmp.lt.s32.totalorder %s4896_s28, %s4044_s12 }
  0x3e   : > { %3546 = vmatprep.mubr.msk.f32.mxu0 %vm306_vm0, %v4289_v23  ;;  %v4315_v30 = vld [vmem:[%s4237_s16 + $0x31] sm:$0xff]  ;;  %v696_v31 = vld [vmem:[%s4237_s16 + $0x28] sm:$0xff]  ;;  %v4327_v32 = vld [vmem:[%s4237_s16 + $0x39] sm:$0xff]  ;;  %1467 = vst [vmem:[#allocation2 + $0x10] sm:$0xff] %v4110_v61 }
  0x3f   : > { %3483 = vmatmul.mubr.msk.f32.vlgmr.msra.gmra.mrb[0].mxu1 %vm306_vm0, %v286_v14  ;;  %3713 = vmatpush3.bf16.msra.mxu0 %v3710_v20  ;;  %v697_v33 = vld [vmem:[%s4237_s16 + $0x30] sm:$0xff]  ;;  %v4331_v34 = vld [vmem:[%s4237_s16 + $0x41] sm:$0xff]  ;;  %v698_v35 = vld [vmem:[%s4237_s16 + $0x38] sm:$0xff]  ;;  %1468 = vst [vmem:[#allocation2 + $0x98] sm:$0xff] %v4110_v61  ;;  %p4042_p12 = pneg %p4041_p10 }
  0x40   : > { %3701 = vmatpush3.bf16.msra.mxu1 %v3698_v9  ;;  %3485 = vmatprep.mubr.msk.f32.mxu1 %vm306_vm0, %v4276_v17  ;;  %v4341_v36 = vld [vmem:[%s4237_s16 + $0x49] sm:$0xff]  ;;  %v699_v37 = vld [vmem:[%s4237_s16 + $0x40] sm:$0xff]  ;;  %v4345_v38 = vld [vmem:[%s4237_s16 + $0x51] sm:$0xff]  ;;  %1469 = vst [vmem:[#allocation2 + $0xa0] sm:$0xff] %v4110_v61 }
  0x41   : > { %3703 = vmatprep.subr.bf16.mxu1 %v3702_v18  ;;  %v700_v39 = vld [vmem:[%s4237_s16 + $0x48] sm:$0xff]  ;;  %v296_v40 = vld [vmem:[%s4237_s16 + $0x59] sm:$0xff]  ;;  %v701_v41 = vld [vmem:[%s4237_s16 + $0x50] sm:$0xff]  ;;  %1470 = vst [vmem:[#allocation2 + $0xa8] sm:$0xff] %v4110_v61 }
  0x42   : > { %3547 = vmatmul.mubr.msk.f32.vlgmr.msra.gmra.mrb[0].mxu0 %vm306_vm0, %v4306_v27  ;;  %v297_v42 = vld [vmem:[%s4237_s16 + $0x61] sm:$0xff]  ;;  %v702_v43 = vld [vmem:[%s4237_s16 + $0x58] sm:$0xff]  ;;  %v298_v44 = vld [vmem:[%s4237_s16 + $0x69] sm:$0xff]  ;;  %1472 = vst [vmem:[#allocation2 + $0x20] sm:$0xff] %v4110_v61 }
  0x43   : > { %3486 = vmatmul.mubr.msk.f32.gmra.mrb[2].mxu1 %vm306_vm0, %v4294_v24  ;;  %3549 = vmatprep.mubr.msk.f32.mxu0 %vm306_vm0, %v695_v29  ;;  %v703_v45 = vld [vmem:[%s4237_s16 + $0x60] sm:$0xff]  ;;  %v299_v46 = vld [vmem:[%s4237_s16 + $0x71] sm:$0xff]  ;;  %v704_v47 = vld [vmem:[%s4237_s16 + $0x68] sm:$0xff]  ;;  %1474 = vst [vmem:[#allocation2 + $0x30] sm:$0xff] %v4110_v61 }
  0x44   : > { %3488 = vmatprep.mubr.msk.f32.mxu1 %vm306_vm0, %v4297_v25  ;;  %3705 = vmatpush3.bf16.msra.mxu1 %v3702_v18  ;;  %v300_v48 = vld [vmem:[%s4237_s16 + $0x79] sm:$0xff]  ;;  %v705_v49 = vld [vmem:[%s4237_s16 + $0x70] sm:$0xff]  ;;  %v266_v54 = vld [vmem:[%s4237_s16 + $0x8] sm:$0xff]  ;;  %1476 = vst [vmem:[#allocation2 + $0x40] sm:$0xff] %v4110_v61 }
  0x45   : > { %3715 = vmatprep.subr.bf16.mxu1 %v4299_v26  ;;  %v265_v50 = vld [vmem:[%s4237_s16] sm:$0xff]  ;;  %v706_v53 = vld [vmem:[%s4237_s16 + $0x78] sm:$0xff]  ;;  %v708_v57 = vld [vmem:[%s4237_s16 + $0x88] sm:$0xff]  ;;  %1478 = vst [vmem:[#allocation2 + $0x50] sm:$0xff] %v4110_v61 }
  0x46   : > { %3550 = vmatmul.mubr.msk.f32.gmra.mrb[2].mxu0 %vm306_vm0, %v696_v31  ;;  %v707_v55 = vld [vmem:[%s4237_s16 + $0x80] sm:$0xff]  ;;  %v938_v59 = vld [vmem:[%s4237_s16 + $0x89] sm:$0xff]  ;;  %v1520_v0 = vld [vmem:[#allocation3 + $0x8] sm:$0xff]  ;;  %1480 = vst [vmem:[#allocation2 + $0x60] sm:$0xff] %v4110_v61 }
  0x47   : > { %3489 = vmatmul.mubr.msk.f32.gmra.mrb[4].mxu1 %vm306_vm0, %v4311_v28  ;;  %3552 = vmatprep.mubr.msk.f32.mxu0 %vm306_vm0, %v697_v33  ;;  %v937_v58 = vld [vmem:[%s4237_s16 + $0x81] sm:$0xff]  ;;  %v1519_v63 = vld [vmem:[#allocation3] sm:$0xff]  ;;  %v1540_v9 = vld [vmem:[#allocation3 + $0xa8] sm:$0xff]  ;;  %1482 = vst [vmem:[#allocation2 + $0x70] sm:$0xff] %v4110_v61 }
  0x48   : > { %3491 = vmatprep.mubr.msk.f32.mxu1 %vm306_vm0, %v4315_v30  ;;  %v3756_v1 = vpack.c.bf16 %v1520_v0, %v1519_v63  ;;  %v1521_v5 = vld [vmem:[#allocation3 + $0x10] sm:$0xff]  ;;  %v1522_v6 = vld [vmem:[#allocation3 + $0x18] sm:$0xff]  ;;  %v1539_v8 = vld [vmem:[#allocation3 + $0xa0] sm:$0xff]  ;;  %1484 = vst [vmem:[#allocation2 + $0x80] sm:$0xff] %v4110_v61 }
  0x49   : > { %v3760_v7 = vpack.c.bf16 %v1522_v6, %v1521_v5  ;;  %v3762_v10 = vpack.c.bf16 %v1540_v9, %v1539_v8  ;;  %v1523_v11 = vld [vmem:[#allocation3 + $0x20] sm:$0xff]  ;;  %v1524_v12 = vld [vmem:[#allocation3 + $0x28] sm:$0xff]  ;;  %v1541_v14 = vld [vmem:[#allocation3 + $0xb0] sm:$0xff]  ;;  %1486 = vst [vmem:[#allocation2 + $0x90] sm:$0xff] %v4110_v61 }
  0x4a   : > { %3553 = vmatmul.mubr.msk.f32.gmra.mrb[4].mxu0 %vm306_vm0, %v698_v35  ;;  %v3764_v13 = vpack.c.bf16 %v1524_v12, %v1523_v11  ;;  %v1542_v15 = vld [vmem:[#allocation3 + $0xb8] sm:$0xff]  ;;  %v1585_v19 = vld [vmem:[#allocation3 + $0x180] sm:$0xff]  ;;  %v1586_v20 = vld [vmem:[#allocation3 + $0x188] sm:$0xff] }
  0x4b   : > { %3492 = vmatmul.mubr.msk.f32.gmra.mrb[6].mxu1 %vm306_vm0, %v4327_v32  ;;  %3555 = vmatprep.mubr.msk.f32.mxu0 %vm306_vm0, %v699_v37  ;;  %v3766_v16 = vpack.c.bf16 %v1542_v15, %v1541_v14  ;;  %v1526_v18 = vld [vmem:[#allocation3 + $0x38] sm:$0xff]  ;;  %v3722_v22 = vpack.c.bf16 %v1586_v20, %v1585_v19  ;;  %v1548_v51 = vld [vmem:[#allocation3 + $0xe8] sm:$0xff]  ;;  %v1549_v63 = vld [vmem:[#allocation3 + $0xf0] sm:$0xff] }
  0x4c   : > { %3494 = vmatprep.mubr.msk.f32.mxu1 %vm306_vm0, %v4331_v34  ;;  %v1576_v60 = vld [vmem:[#allocation3 + $0x138] sm:$0xff]  ;;  %v1533_v2 = vld [vmem:[#allocation3 + $0x70] sm:$0xff]  ;;  %v1594_v5 = vld [vmem:[#allocation3 + $0x1c8] sm:$0xff] }
  0x4d   : > { %3723 = vmatprep.subr.bf16.mxu0 %v3722_v22  ;;  %v1550_v0 = vld [vmem:[#allocation3 + $0xf8] sm:$0xff]  ;;  %v1577_v8 = vld [vmem:[#allocation3 + $0x140] sm:$0xff]  ;;  %v1578_v9 = vld [vmem:[#allocation3 + $0x148] sm:$0xff] }
  0x4e   : > { %3556 = vmatmul.mubr.msk.f32.gmra.mrb[6].mxu0 %vm306_vm0, %v700_v39  ;;  %v1534_v3 = vld [vmem:[#allocation3 + $0x78] sm:$0xff]  ;;  %v1595_v11 = vld [vmem:[#allocation3 + $0x1d0] sm:$0xff]  ;;  %v1598_v19 = vld [vmem:[#allocation3 + $0x1e8] sm:$0xff] }
  0x4f   : > { %3495 = vmatmul.mubr.msk.f32.gmra.mrb[8].mxu1 %vm306_vm0, %v4341_v36  ;;  %3558 = vmatprep.mubr.msk.f32.mxu0 %vm306_vm0, %v701_v41  ;;  %v3784_v6 = vpack.c.bf16 %v1534_v3, %v1533_v2  ;;  %v1596_v12 = vld [vmem:[#allocation3 + $0x1d8] sm:$0xff]  ;;  %v1579_v14 = vld [vmem:[#allocation3 + $0x150] sm:$0xff]  ;;  %v1581_v22 = vld [vmem:[#allocation3 + $0x160] sm:$0xff] }
  0x50   : > { %3497 = vmatprep.mubr.msk.f32.mxu1 %vm306_vm0, %v4345_v38  ;;  %v1580_v15 = vld [vmem:[#allocation3 + $0x158] sm:$0xff]  ;;  %v2158_v3 = vld [vmem:[#allocation3 + $0x350] sm:$0xff] }
  0x51   : > { %v1488_v20 = vld [vmem:[#allocation2 + $0xf] sm:$0xff] }
  0x52   : > { %3559 = vmatmul.mubr.msk.f32.gmra.mrb[8].mxu0 %vm306_vm0, %v702_v43  ;;  %v2175_v2 = vld [vmem:[#allocation3 + $0x3d8] sm:$0xff] }
  0x53   : > { %3498 = vmatmul.mubr.msk.f32.gmra.mrb[10].mxu1 %vm306_vm0, %v296_v40  ;;  %3561 = vmatprep.mubr.msk.f32.mxu0 %vm306_vm0, %v703_v45 }
  0x54   : > { %3500 = vmatprep.mubr.msk.f32.mxu1 %vm306_vm0, %v297_v42 }
  0x56   : > { %3562 = vmatmul.mubr.msk.f32.gmra.mrb[10].mxu0 %vm306_vm0, %v704_v47 }
  0x57   : > { %3501 = vmatmul.mubr.msk.f32.gmra.mrb[12].mxu1 %vm306_vm0, %v298_v44  ;;  %3564 = vmatprep.mubr.msk.f32.mxu0 %vm306_vm0, %v705_v49 }
  0x58   : > { %3503 = vmatprep.mubr.msk.f32.mxu1 %vm306_vm0, %v299_v46 }
  0x5a   : > { %3565 = vmatmul.mubr.msk.f32.gmra.mrb[12].mxu0 %vm306_vm0, %v706_v53 }
  0x5b   : > { %3504 = vmatmul.mubr.msk.f32.gmra.mrb[14].mxu1 %vm306_vm0, %v300_v48  ;;  %3567 = vmatprep.mubr.msk.f32.mxu0 %vm306_vm0, %v707_v55  ;;  %v1591_v55 = vld [vmem:[#allocation3 + $0x1b0] sm:$0xff] }
  0x5c   : > { %3514 = vmatprep.mubr.msk.f32.mxu1 %vm306_vm0, %v265_v50  ;;  %v1547_v50 = vld [vmem:[#allocation3 + $0xe0] sm:$0xff] }
  0x5d   : > { %v3778_v52 = vpack.c.bf16 %v1548_v51, %v1547_v50  ;;  %v2153_v50 = vld [vmem:[#allocation3 + $0x328] sm:$0xff] }
  0x5e   : > { %3568 = vmatmul.mubr.msk.f32.gmra.mrb[14].mxu0 %vm306_vm0, %v708_v57 }
  0x5f   : > { %3515 = vmatmul.mubr.msk.f32.vlgmr.msra.gmra.mrb[16].mxu1 %vm306_vm0, %v266_v54  ;;  %v1532_v54 = vld [vmem:[#allocation3 + $0x68] sm:$0xff] }
  0x60   : > { %3717 = vmatpush3.bf16.msra.mxu1 %v4299_v26  ;;  %3517 = vmatprep.mubr.msk.f32.mxu1 %vm306_vm0, %v4289_v23  ;;  %v1569_v23 = vld [vmem:[#allocation3 + $0x100] sm:$0xff] }
  0x61   : > { %3719 = vmatprep.subr.bf16.mxu1 %v3718_v56  ;;  %v1543_v26 = vld [vmem:[#allocation3 + $0xc0] sm:$0xff] }
  0x63   : > { %3518 = vmatmul.mubr.msk.f32.gmra.mrb[18].mxu1 %vm306_vm0, %v4306_v27  ;;  %v1544_v27 = vld [vmem:[#allocation3 + $0xc8] sm:$0xff] }
  0x64   : > { %3520 = vmatprep.mubr.msk.f32.mxu1 %vm306_vm0, %v695_v29  ;;  %3721 = vmatpush3.bf16.msra.mxu1 %v3718_v56  ;;  %v1527_v29 = vld [vmem:[#allocation3 + $0x40] sm:$0xff]  ;;  %v1592_v56 = vld [vmem:[#allocation3 + $0x1b8] sm:$0xff] }
  0x65   : > { %3755 = vmatprep.subr.bf16.mxu1 %v3754_v62 }
  0x67   : > { %3521 = vmatmul.mubr.msk.f32.gmra.mrb[20].mxu1 %vm306_vm0, %v696_v31  ;;  %v1587_v31 = vld [vmem:[#allocation3 + $0x190] sm:$0xff] }
  0x68   : > { %3523 = vmatprep.mubr.msk.f32.mxu1 %vm306_vm0, %v697_v33 }
  0x6b   : > { %3524 = vmatmul.mubr.msk.f32.gmra.mrb[22].mxu1 %vm306_vm0, %v698_v35  ;;  %v1571_v35 = vld [vmem:[#allocation3 + $0x110] sm:$0xff] }
  0x6c   : > { %3526 = vmatprep.mubr.msk.f32.mxu1 %vm306_vm0, %v699_v37 }
  0x6f   : > { %3527 = vmatmul.mubr.msk.f32.gmra.mrb[24].mxu1 %vm306_vm0, %v700_v39  ;;  %v1546_v39 = vld [vmem:[#allocation3 + $0xd8] sm:$0xff] }
  0x70   : > { %3529 = vmatprep.mubr.msk.f32.mxu1 %vm306_vm0, %v701_v41  ;;  %v1529_v41 = vld [vmem:[#allocation3 + $0x50] sm:$0xff] }
  0x73   : > { %3530 = vmatmul.mubr.msk.f32.gmra.mrb[26].mxu1 %vm306_vm0, %v702_v43  ;;  %v1589_v43 = vld [vmem:[#allocation3 + $0x1a0] sm:$0xff] }
  0x74   : > { %3532 = vmatprep.mubr.msk.f32.mxu1 %vm306_vm0, %v703_v45 }
  0x77   : > { %3533 = vmatmul.mubr.msk.f32.gmra.mrb[28].mxu1 %vm306_vm0, %v704_v47  ;;  %v1573_v47 = vld [vmem:[#allocation3 + $0x120] sm:$0xff] }
  0x78   : > { %3535 = vmatprep.mubr.msk.f32.mxu1 %vm306_vm0, %v705_v49 }
  0x7b   : > { %3536 = vmatmul.mubr.msk.f32.gmra.mrb[30].mxu1 %vm306_vm0, %v706_v53  ;;  %v1531_v53 = vld [vmem:[#allocation3 + $0x60] sm:$0xff] }
  0x7c   : > { %3578 = vmatprep.mubr.msk.f32.mxu1 %vm306_vm0, %v4276_v17  ;;  %v1525_v17 = vld [vmem:[#allocation3 + $0x30] sm:$0xff]  ;;  %v3780_v57 = vpack.c.bf16 %v1532_v54, %v1531_v53  ;;  %v2171_v53 = vld [vmem:[#allocation3 + $0x3b8] sm:$0xff] }
  0x7d   : > { %v3768_v21 = vpack.c.bf16 %v1526_v18, %v1525_v17  ;;  %v3744_v17 = vpack.c.bf16 %v1580_v15, %v1579_v14  ;;  %v1597_v18 = vld [vmem:[#allocation3 + $0x1e0] sm:$0xff]  ;;  %v2154_v54 = vld [vmem:[#allocation3 + $0x330] sm:$0xff] }
  0x7e   : > { %v2178_v15 = vld [vmem:[#allocation3 + $0x3f0] sm:$0xff] }
  0x7f   : > { %3579 = vmatmul.mubr.msk.f32.vlgmr.msra.gmra.mrb[32].mxu1 %vm306_vm0, %v4294_v24  ;;  %v1570_v24 = vld [vmem:[#allocation3 + $0x108] sm:$0xff] }
  0x80   : > { %3581 = vmatprep.mubr.msk.f32.mxu1 %vm306_vm0, %v4297_v25  ;;  %3757 = vmatpush3.bf16.msra.mxu1 %v3756_v1  ;;  %v3724_v25 = vpack.c.bf16 %v1570_v24, %v1569_v23  ;;  %v3782_v1 = vpack.c.bf16 %v1550_v0, %v1549_v63  ;;  %v1582_v23 = vld [vmem:[#allocation3 + $0x168] sm:$0xff] }
  0x81   : > { %3759 = vmatprep.subr.bf16.mxu1 %v3758_v4  ;;  %v1593_v4 = vld [vmem:[#allocation3 + $0x1c0] sm:$0xff]  ;;  %v3748_v24 = vpack.c.bf16 %v1582_v23, %v1581_v22  ;;  %v2157_v63 = vld [vmem:[#allocation3 + $0x348] sm:$0xff] }
  0x82   : > { %3725 = vmatpush3.bf16.msra.mxu0 %v3724_v25  ;;  %v1599_v25 = vld [vmem:[#allocation3 + $0x1f0] sm:$0xff] }
  0x83   : > { %3582 = vmatmul.mubr.msk.f32.gmra.mrb[34].mxu1 %vm306_vm0, %v4311_v28  ;;  %v3770_v28 = vpack.c.bf16 %v1544_v27, %v1543_v26  ;;  %v1600_v26 = vld [vmem:[#allocation3 + $0x1f8] sm:$0xff] }
  0x84   : > { %3584 = vmatprep.mubr.msk.f32.mxu1 %vm306_vm0, %v4315_v30  ;;  %3761 = vmatpush3.bf16.msra.mxu1 %v3760_v7  ;;  %v1528_v30 = vld [vmem:[#allocation3 + $0x48] sm:$0xff]  ;;  %v3738_v7 = vpack.c.bf16 %v1594_v5, %v1593_v4  ;;  %v3750_v27 = vpack.c.bf16 %v1600_v26, %v1599_v25  ;;  %v2159_v4 = vld [vmem:[#allocation3 + $0x358] sm:$0xff] }
  0x85   : > { %3763 = vmatprep.subr.bf16.mxu1 %v3762_v10  ;;  %v3772_v33 = vpack.c.bf16 %v1528_v30, %v1527_v29  ;;  %v3740_v10 = vpack.c.bf16 %v1578_v9, %v1577_v8  ;;  %v1584_v29 = vld [vmem:[#allocation3 + $0x178] sm:$0xff]  ;;  %v2177_v8 = vld [vmem:[#allocation3 + $0x3e8] sm:$0xff] }
  0x87   : > { %3585 = vmatmul.mubr.msk.f32.gmra.mrb[36].mxu1 %vm306_vm0, %v4327_v32  ;;  %v1588_v32 = vld [vmem:[#allocation3 + $0x198] sm:$0xff] }
  0x88   : > { %3587 = vmatprep.mubr.msk.f32.mxu1 %vm306_vm0, %v4331_v34  ;;  %3765 = vmatpush3.bf16.msra.mxu1 %v3764_v13  ;;  %v3726_v34 = vpack.c.bf16 %v1588_v32, %v1587_v31  ;;  %v3742_v13 = vpack.c.bf16 %v1596_v12, %v1595_v11  ;;  %v1939_v31 = vld [vmem:[#allocation3 + $0x280] sm:$0xff]  ;;  %v1940_v32 = vld [vmem:[#allocation3 + $0x288] sm:$0xff] }
  0x89   : > { %3767 = vmatprep.subr.bf16.mxu1 %v3766_v16  ;;  %v1487_v16 = vld [vmem:[#allocation2 + $0x7] sm:$0xff]  ;;  %v2161_v11 = vld [vmem:[#allocation3 + $0x368] sm:$0xff] }
  0x8a   : > { %3727 = vmatprep.subr.bf16.mxu0 %v3726_v34  ;;  %v2164_v34 = vld [vmem:[#allocation3 + $0x380] sm:$0xff] }
  0x8b   : > { %3588 = vmatmul.mubr.msk.f32.gmra.mrb[38].mxu1 %vm306_vm0, %v4341_v36  ;;  %v1572_v36 = vld [vmem:[#allocation3 + $0x118] sm:$0xff] }
  0x8c   : > { %3590 = vmatprep.mubr.msk.f32.mxu1 %vm306_vm0, %v4345_v38  ;;  %3769 = vmatpush3.bf16.msra.mxu1 %v3768_v21  ;;  %v3728_v37 = vpack.c.bf16 %v1572_v36, %v1571_v35  ;;  %v1545_v38 = vld [vmem:[#allocation3 + $0xd0] sm:$0xff]  ;;  %v3746_v21 = vpack.c.bf16 %v1598_v19, %v1597_v18  ;;  %v2165_v35 = vld [vmem:[#allocation3 + $0x388] sm:$0xff]  ;;  %v2163_v18 = vld [vmem:[#allocation3 + $0x378] sm:$0xff] }
  0x8d   : > { %3771 = vmatprep.subr.bf16.mxu1 %v3770_v28  ;;  %v1583_v28 = vld [vmem:[#allocation3 + $0x170] sm:$0xff]  ;;  %v3818_v36 = vpack.c.bf16 %v2165_v35, %v2164_v34 }
  0x8e   : > { %3729 = vmatpush3.bf16.msra.mxu0 %v3728_v37  ;;  %v3752_v30 = vpack.c.bf16 %v1584_v29, %v1583_v28  ;;  %v2148_v37 = vld [vmem:[#allocation3 + $0x300] sm:$0xff] }
  0x8f   : > { %3591 = vmatmul.mubr.msk.f32.gmra.mrb[40].mxu1 %vm306_vm0, %v296_v40  ;;  %v3774_v40 = vpack.c.bf16 %v1546_v39, %v1545_v38  ;;  %v2149_v38 = vld [vmem:[#allocation3 + $0x308] sm:$0xff] }
  0x90   : > { %3593 = vmatprep.mubr.msk.f32.mxu1 %vm306_vm0, %v297_v42  ;;  %3773 = vmatpush3.bf16.msra.mxu1 %v3772_v33  ;;  %v1530_v42 = vld [vmem:[#allocation3 + $0x58] sm:$0xff]  ;;  %v3786_v33 = vpack.c.bf16 %v1940_v32, %v1939_v31  ;;  %v3820_v39 = vpack.c.bf16 %v2149_v38, %v2148_v37 }
  0x91   : > { %v3776_v45 = vpack.c.bf16 %v1530_v42, %v1529_v41  ;;  %3775 = vmatprep.subr.bf16.mxu1 %v3774_v40  ;;  %v2166_v40 = vld [vmem:[#allocation3 + $0x390] sm:$0xff]  ;;  %v2167_v41 = vld [vmem:[#allocation3 + $0x398] sm:$0xff] }
  0x92   : > { %v2150_v42 = vld [vmem:[#allocation3 + $0x310] sm:$0xff] }
  0x93   : > { %3594 = vmatmul.mubr.msk.f32.gmra.mrb[42].mxu1 %vm306_vm0, %v298_v44  ;;  %v1590_v44 = vld [vmem:[#allocation3 + $0x1a8] sm:$0xff] }
  0x94   : > { %3596 = vmatprep.mubr.msk.f32.mxu1 %vm306_vm0, %v299_v46  ;;  %v3730_v46 = vpack.c.bf16 %v1590_v44, %v1589_v43  ;;  %3777 = vmatpush3.bf16.msra.mxu1 %v3776_v45  ;;  %v2151_v43 = vld [vmem:[#allocation3 + $0x318] sm:$0xff]  ;;  %v3822_v44 = vpack.c.bf16 %v2167_v41, %v2166_v40 }
  0x95   : > { %3779 = vmatprep.subr.bf16.mxu1 %v3778_v52  ;;  %v3824_v45 = vpack.c.bf16 %v2151_v43, %v2150_v42  ;;  %v2170_v52 = vld [vmem:[#allocation3 + $0x3b0] sm:$0xff] }
  0x96   : > { %3731 = vmatprep.subr.bf16.mxu0 %v3730_v46  ;;  %v2168_v46 = vld [vmem:[#allocation3 + $0x3a0] sm:$0xff] }
  0x97   : > { %3597 = vmatmul.mubr.msk.f32.gmra.mrb[44].mxu1 %vm306_vm0, %v300_v48  ;;  %v1574_v48 = vld [vmem:[#allocation3 + $0x128] sm:$0xff] }
  0x98   : > { %3599 = vmatprep.mubr.msk.f32.mxu1 %vm306_vm0, %v937_v58  ;;  %v3732_v49 = vpack.c.bf16 %v1574_v48, %v1573_v47  ;;  %v3734_v58 = vpack.c.bf16 %v1592_v56, %v1591_v55  ;;  %3781 = vmatpush3.bf16.msra.mxu1 %v3780_v57  ;;  %v2169_v47 = vld [vmem:[#allocation3 + $0x3a8] sm:$0xff]  ;;  %v2155_v55 = vld [vmem:[#allocation3 + $0x338] sm:$0xff]  ;;  %v3830_v56 = vpack.c.bf16 %v2171_v53, %v2170_v52 }
  0x99   : > { %3783 = vmatprep.subr.bf16.mxu1 %v3782_v1  ;;  %v3826_v48 = vpack.c.bf16 %v2169_v47, %v2168_v46  ;;  %v3832_v57 = vpack.c.bf16 %v2155_v55, %v2154_v54  ;;  %v2174_v1 = vld [vmem:[#allocation3 + $0x3d0] sm:$0xff] }
  0x9a   : > { %3733 = vmatpush3.bf16.msra.mxu0 %v3732_v49  ;;  %v2152_v49 = vld [vmem:[#allocation3 + $0x320] sm:$0xff]  ;;  %v3838_v5 = vpack.c.bf16 %v2175_v2, %v2174_v1 }
  0x9b   : > { %3600 = vmatmul.mubr.msk.f32.gmra.mrb[46].mxu1 %vm306_vm0, %v938_v59  ;;  %v1575_v59 = vld [vmem:[#allocation3 + $0x130] sm:$0xff]  ;;  %3735 = vmatprep.subr.bf16.mxu0 %v3734_v58  ;;  %v3828_v51 = vpack.c.bf16 %v2153_v50, %v2152_v49  ;;  %v2172_v58 = vld [vmem:[#allocation3 + $0x3c0] sm:$0xff] }
  0x9c   : > { %1810 = vmatprep.mubr.f32.mxu1 %v4110_v61  ;;  %v3736_v62 = vpack.c.bf16 %v1576_v60, %v1575_v59  ;;  %3785 = vmatpush3.bf16.msra.mxu1 %v3784_v6  ;;  %v2173_v59 = vld [vmem:[#allocation3 + $0x3c8] sm:$0xff]  ;;  %v3840_v6 = vpack.c.bf16 %v2159_v4, %v2158_v3 }
  0x9d   : > { %3819 = vmatprep.subr.bf16.mxu1 %v3818_v36  ;;  %v3834_v60 = vpack.c.bf16 %v2173_v59, %v2172_v58 }
  0x9e   : > { %3737 = vmatpush3.bf16.msra.mxu0 %v3736_v62  ;;  %v2156_v62 = vld [vmem:[#allocation3 + $0x340] sm:$0xff] }
  0x9f   : > { %3739 = vmatprep.subr.bf16.mxu0 %v3738_v7  ;;  %1811 = vmatmul.mubr.f32.vlgmr.msra.gmra.mrb[48].mxu1 %v1487_v16  ;;  %v3836_v0 = vpack.c.bf16 %v2157_v63, %v2156_v62  ;;  %v2176_v7 = vld [vmem:[#allocation3 + $0x3e0] sm:$0xff]  ;;  %v2179_v16 = vld [vmem:[#allocation3 + $0x3f8] sm:$0xff] }
  0xa0   : > { %1815 = vmatprep.mubr.f32.mxu1 %v4110_v61  ;;  %3821 = vmatpush3.bf16.msra.mxu1 %v3820_v39  ;;  %v3842_v9 = vpack.c.bf16 %v2177_v8, %v2176_v7 }
  0xa1   : > { %3823 = vmatprep.subr.bf16.mxu1 %v3822_v44 }
  0xa2   : > { %3741 = vmatpush3.bf16.msra.mxu0 %v3740_v10  ;;  %v2160_v10 = vld [vmem:[#allocation3 + $0x360] sm:$0xff] }
  0xa3   : > { %3743 = vmatprep.subr.bf16.mxu0 %v3742_v13  ;;  %1816 = vmatmul.mubr.f32.gmra.mrb[50].mxu1 %v1488_v20  ;;  %v3844_v13 = vpack.c.bf16 %v2161_v11, %v2160_v10  ;;  %v3846_v20 = vpack.c.bf16 %v2179_v16, %v2178_v15 }
  0xa4   : > { %3825 = vmatpush3.bf16.msra.mxu1 %v3824_v45 }
  0xa5   : > { %3827 = vmatprep.subr.bf16.mxu1 %v3826_v48 }
  0xa6   : > { %3745 = vmatpush3.bf16.msra.mxu0 %v3744_v17  ;;  %v2162_v17 = vld [vmem:[#allocation3 + $0x370] sm:$0xff] }
  0xa7   : > { %3747 = vmatprep.subr.bf16.mxu0 %v3746_v21  ;;  %v3848_v21 = vpack.c.bf16 %v2163_v18, %v2162_v17 }
  0xa8   : > { %3829 = vmatpush3.bf16.msra.mxu1 %v3828_v51 }
  0xa9   : > { %3831 = vmatprep.subr.bf16.mxu1 %v3830_v56 }
  0xaa   : > { %3749 = vmatpush3.bf16.msra.mxu0 %v3748_v24 }
  0xab   : > { %3751 = vmatprep.subr.bf16.mxu0 %v3750_v27 }
  0xac   : > { %3833 = vmatpush3.bf16.msra.mxu1 %v3832_v57 }
  0xad   : > { %3835 = vmatprep.subr.bf16.mxu1 %v3834_v60 }
  0xae   : > { %3753 = vmatpush3.bf16.msra.mxu0 %v3752_v30 }
  0xaf   : > { %3787 = vmatprep.subr.bf16.mxu0 %v3786_v33 }
  0xb0   : > { %3837 = vmatpush3.bf16.msra.mxu1 %v3836_v0 }
  0xb1   : > { %3839 = vmatprep.subr.bf16.mxu1 %v3838_v5 }
  0xb4   : > { %3841 = vmatpush3.bf16.msra.mxu1 %v3840_v6 }
  0xb5   : > { %3843 = vmatprep.subr.bf16.mxu1 %v3842_v9 }
  0xb8   : > { %3845 = vmatpush3.bf16.msra.mxu1 %v3844_v13 }
  0xb9   : > { %3847 = vmatprep.subr.bf16.mxu1 %v3846_v20 }
  0xbc   : > { %3849 = vmatpush3.bf16.msra.mxu1 %v3848_v21 }
 0x112   : > { %v3484_v12 = vpop.f32.mrb[0].mxu1 }
 0x113   : > { %v421_v14 = vpop.f32.mrb[1].mxu1 }
 0x115   : > { %v3548_v23 = vpop.f32.mrb[0].mxu0 }
 0x116   : > { %v3487_v19 = vpop.f32.mrb[2].mxu1  ;;  %v828_v25 = vpop.f32.mrb[1].mxu0 }
 0x117   : > { %v431_v22 = vpop.f32.mrb[3].mxu1 }
 0x119   : > { %v3551_v27 = vpop.f32.mrb[2].mxu0 }
 0x11a   : > { %v3490_v24 = vpop.f32.mrb[4].mxu1  ;;  %v838_v29 = vpop.f32.mrb[3].mxu0 }
 0x11b   : > { %v441_v26 = vpop.f32.mrb[5].mxu1 }
 0x11d   : > { %v3554_v31 = vpop.f32.mrb[4].mxu0 }
 0x11e   : > { %v3493_v28 = vpop.f32.mrb[6].mxu1  ;;  %v848_v33 = vpop.f32.mrb[5].mxu0 }
 0x11f   : > { %v451_v30 = vpop.f32.mrb[7].mxu1 }
 0x121   : > { %v3557_v35 = vpop.f32.mrb[6].mxu0 }
 0x122   : > { %v3496_v32 = vpop.f32.mrb[8].mxu1  ;;  %v858_v37 = vpop.f32.mrb[7].mxu0  ;;  %v1924_v35 = vld [vmem:[#allocation3 + $0x208] sm:$0xff] }
 0x123   : > { %v461_v34 = vpop.f32.mrb[9].mxu1 }
 0x125   : > { %v3560_v39 = vpop.f32.mrb[8].mxu0 }
 0x126   : > { %v3499_v36 = vpop.f32.mrb[10].mxu1  ;;  %v868_v41 = vpop.f32.mrb[9].mxu0  ;;  %v1942_v39 = vld [vmem:[#allocation3 + $0x298] sm:$0xff] }
 0x127   : > { %v471_v38 = vpop.f32.mrb[11].mxu1 }
 0x129   : > { %v3563_v43 = vpop.f32.mrb[10].mxu0 }
 0x12a   : > { %v3502_v40 = vpop.f32.mrb[12].mxu1  ;;  %v878_v45 = vpop.f32.mrb[11].mxu0  ;;  %v1551_v43 = vld [vmem:[#allocation2 + $0x9] sm:$0xff] }
 0x12b   : > { %v481_v42 = vpop.f32.mrb[13].mxu1 }
 0x12d   : > { %v3566_v47 = vpop.f32.mrb[12].mxu0 }
 0x12e   : > { %v3505_v44 = vpop.f32.mrb[14].mxu1  ;;  %v888_v49 = vpop.f32.mrb[13].mxu0  ;;  %v1925_v47 = vld [vmem:[#allocation3 + $0x210] sm:$0xff] }
 0x12f   : > { %v491_v46 = vpop.f32.mrb[15].mxu1 }
 0x131   : > { %v3569_v52 = vpop.f32.mrb[14].mxu0 }
 0x132   : > { %v3516_v48 = vpop.f32.mrb[16].mxu1  ;;  %v898_v55 = vpop.f32.mrb[15].mxu0  ;;  %v1944_v52 = vld [vmem:[#allocation3 + $0x2a8] sm:$0xff] }
 0x133   : > { %v614_v50 = vpop.f32.mrb[17].mxu1  ;;  %v1926_v48 = vld [vmem:[#allocation3 + $0x218] sm:$0xff] }
 0x134   : > { %v615_v51 = vadd.f32 %v614_v50, %v421_v14 }
 0x136   : > { %v907_v53 = vadd.f32 %v828_v25, %v615_v51  ;;  %v3519_v54 = vpop.f32.mrb[18].mxu1  ;;  %v1943_v51 = vld [vmem:[#allocation3 + $0x2a0] sm:$0xff] }
 0x137   : > { %v624_v56 = vpop.f32.mrb[19].mxu1 }
 0x138   : > { %v625_v57 = vadd.f32 %v624_v56, %v431_v22  ;;  %v4460_v22 = vld [vmem:[%s4947_s4] ss:$0 sm:$0xff] }
 0x13a   : > { %v909_v58 = vadd.f32 %v838_v29, %v625_v57  ;;  %v3522_v59 = vpop.f32.mrb[20].mxu1  ;;  %v3792_v57 = vpack.c.bf16 %v1926_v48, %v1925_v47  ;;  %v1935_v48 = vld [vmem:[#allocation3 + $0x260] sm:$0xff] }
 0x13b   : > { %v634_v60 = vpop.f32.mrb[21].mxu1  ;;  %v1927_v59 = vld [vmem:[#allocation3 + $0x220] sm:$0xff] }
 0x13c   : > { %v635_v62 = vadd.f32 %v634_v60, %v441_v26  ;;  %v1928_v60 = vld [vmem:[#allocation3 + $0x228] sm:$0xff] }
 0x13e   : > { %v911_v63 = vadd.f32 %v848_v33, %v635_v62  ;;  %v3525_v0 = vpop.f32.mrb[22].mxu1 }
 0x13f   : > { %v644_v1 = vpop.f32.mrb[23].mxu1 }
 0x140   : > { %v645_v2 = vadd.f32 %v644_v1, %v451_v30  ;;  %v1945_v1 = vld [vmem:[#allocation3 + $0x2b0] sm:$0xff] }
 0x142   : > { %v913_v3 = vadd.f32 %v858_v37, %v645_v2  ;;  %v3528_v4 = vpop.f32.mrb[24].mxu1  ;;  %v1946_v2 = vld [vmem:[#allocation3 + $0x2b8] sm:$0xff] }
 0x143   : > { %v654_v5 = vpop.f32.mrb[25].mxu1 }
 0x144   : > { %v655_v6 = vadd.f32 %v654_v5, %v461_v34  ;;  %v1923_v34 = vld [vmem:[#allocation3 + $0x200] sm:$0xff] }
 0x145   : > { %v3788_v44 = vpack.c.bf16 %v1924_v35, %v1923_v34 }
 0x146   : > { %v915_v7 = vadd.f32 %v868_v41, %v655_v6  ;;  %v3531_v8 = vpop.f32.mrb[26].mxu1 }
 0x147   : > { %v664_v9 = vpop.f32.mrb[27].mxu1  ;;  %v3798_v8 = vpack.c.bf16 %v1946_v2, %v1945_v1 }
 0x148   : > { %v665_v10 = vadd.f32 %v664_v9, %v471_v38  ;;  %v1941_v38 = vld [vmem:[#allocation3 + $0x290] sm:$0xff] }
 0x149   : > { %v1929_v9 = vld [vmem:[#allocation3 + $0x230] sm:$0xff] }
 0x14a   : > { %v4451_v11 = vadd.f32 %v878_v45, %v665_v10  ;;  %v3534_v12 = vpop.f32.mrb[28].mxu1  ;;  %v1930_v10 = vld [vmem:[#allocation3 + $0x238] sm:$0xff] }
 0x14b   : > { %v674_v13 = vpop.f32.mrb[29].mxu1 }
 0x14c   : > { %v675_v14 = vadd.f32 %v674_v13, %v481_v42 }
 0x14e   : > { %v4453_v15 = vadd.f32 %v888_v49, %v675_v14  ;;  %v3537_v16 = vpop.f32.mrb[30].mxu1 }
 0x14f   : > { %v684_v17 = vpop.f32.mrb[31].mxu1  ;;  %v1947_v16 = vld [vmem:[#allocation3 + $0x2c0] sm:$0xff] }
 0x150   : > { %v685_v18 = vadd.f32 %v684_v17, %v491_v46  ;;  %v3790_v46 = vpack.c.bf16 %v1942_v39, %v1941_v38  ;;  %v1948_v17 = vld [vmem:[#allocation3 + $0x2c8] sm:$0xff]  ;;  %v1933_v39 = vld [vmem:[#allocation3 + $0x250] sm:$0xff] }
 0x152   : > { %v4455_v19 = vadd.f32 %v898_v55, %v685_v18  ;;  %v3580_v20 = vpop.f32.mrb[32].mxu1 }
 0x153   : > { %v1058_v21 = vpop.f32.mrb[33].mxu1 }
 0x154   : > { %v1137_v23 = vadd.f32 %v1058_v21, %v907_v53 }
 0x156   : > { %v1385_v24 = vadd.f32 %v4460_v22, %v1137_v23  ;;  %v3583_v25 = vpop.f32.mrb[34].mxu1  ;;  %v3800_v23 = vpack.c.bf16 %v1930_v10, %v1929_v9 }
 0x157   : > { %v1068_v26 = vpop.f32.mrb[35].mxu1  ;;  %v1931_v25 = vld [vmem:[#allocation3 + $0x240] sm:$0xff] }
 0x158   : > { %v4463_v27 = vmax.f32 %v1385_v24, 0.0  ;;  %v1139_v28 = vadd.f32 %v1068_v26, %v909_v58  ;;  %v3794_v58 = vpack.c.bf16 %v1944_v52, %v1943_v51  ;;  %v3802_v24 = vpack.c.bf16 %v1948_v17, %v1947_v16  ;;  %v1932_v26 = vld [vmem:[#allocation3 + $0x248] sm:$0xff]  ;;  %v1953_v51 = vld [vmem:[#allocation3 + $0x2f0] sm:$0xff]  ;;  %v1954_v52 = vld [vmem:[#allocation3 + $0x2f8] sm:$0xff] }
 0x15a   : > { %1471 = vst [vmem:[#allocation2 + $0x18] sm:$0xff] %v4463_v27  ;;  %v1387_v29 = vadd.f32 %v4460_v22, %v1139_v28  ;;  %v3586_v30 = vpop.f32.mrb[36].mxu1  ;;  %1820 = vmatprep.mubr.f32.mxu1 %v4463_v27 }
 0x15b   : > { %v1078_v31 = vpop.f32.mrb[37].mxu1 }
 0x15c   : > { %v4468_v32 = vmax.f32 %v1387_v29, 0.0  ;;  %v1141_v33 = vadd.f32 %v1078_v31, %v911_v63  ;;  %v1949_v31 = vld [vmem:[#allocation3 + $0x2d0] sm:$0xff] }
 0x15e   : > { %1473 = vst [vmem:[#allocation2 + $0x28] sm:$0xff] %v4468_v32  ;;  %v1389_v36 = vadd.f32 %v4460_v22, %v1141_v33  ;;  %v3589_v37 = vpop.f32.mrb[38].mxu1  ;;  %v1950_v33 = vld [vmem:[#allocation3 + $0x2d8] sm:$0xff] }
 0x15f   : > { %v1088_v40 = vpop.f32.mrb[39].mxu1  ;;  %v3804_v37 = vpack.c.bf16 %v1932_v26, %v1931_v25  ;;  %v3806_v38 = vpack.c.bf16 %v1950_v33, %v1949_v31  ;;  %v2361_v31 = vld [vmem:[#allocation3 + $0x420] sm:$0xff]  ;;  %v2362_v33 = vld [vmem:[#allocation3 + $0x428] sm:$0xff] }
 0x160   : > { %v4472_v41 = vmax.f32 %v1389_v36, 0.0  ;;  %v1143_v42 = vadd.f32 %v1088_v40, %v913_v3  ;;  %v1934_v40 = vld [vmem:[#allocation3 + $0x258] sm:$0xff] }
 0x161   : > { %v1489_v45 = vld [vmem:[#allocation2 + $0x17] sm:$0xff]  ;;  %v1490_v54 = vld [vmem:[#allocation2 + $0x1f] sm:$0xff]  ;;  %v3808_v47 = vpack.c.bf16 %v1934_v40, %v1933_v39 }
 0x162   : > { %1475 = vst [vmem:[#allocation2 + $0x38] sm:$0xff] %v4472_v41  ;;  %v1391_v49 = vadd.f32 %v4460_v22, %v1143_v42  ;;  %v3592_v50 = vpop.f32.mrb[40].mxu1  ;;  %1665 = vmatprep.mubr.f32.mxu0 %v1489_v45  ;;  %1821 = vmatmul.mubr.f32.gmra.mrb[52].mxu1 %v1489_v45  ;;  %v1552_v0 = vld [vmem:[#allocation2 + $0x11] sm:$0xff]  ;;  %v4490_v14 = vld [vmem:[#allocation2 + $0x19] sm:$0xff] }
 0x163   : > { %v1098_v53 = vpop.f32.mrb[41].mxu1  ;;  %1666 = vmatmul.mubr.f32.vlgmr.msra.gmra.mrb[16].mxu0 %v1551_v43  ;;  %1825 = vmatprep.mubr.f32.mxu1 %v4110_v61  ;;  %v1952_v45 = vld [vmem:[#allocation3 + $0x2e8] sm:$0xff] }
 0x164   : > { %v4477_v55 = vmax.f32 %v1391_v49, 0.0  ;;  %v1145_v56 = vadd.f32 %v1098_v53, %v915_v7  ;;  %1670 = vmatprep.mubr.f32.mxu0 %v1490_v54  ;;  %3789 = vmatpush3.bf16.msra.mxu0 %v3788_v44  ;;  %v3796_v7 = vpack.c.bf16 %v1928_v60, %v1927_v59  ;;  %v1951_v44 = vld [vmem:[#allocation3 + $0x2e0] sm:$0xff]  ;;  %v1936_v49 = vld [vmem:[#allocation3 + $0x268] sm:$0xff] }
 0x165   : > { %3791 = vmatprep.subr.bf16.mxu0 %v3790_v46  ;;  %v4481_v4 = vld [vmem:[#allocation2 + $0x27] sm:$0xff]  ;;  %v4494_v18 = vld [vmem:[#allocation2 + $0x2f] sm:$0xff] }
 0x166   : > { %1477 = vst [vmem:[#allocation2 + $0x48] sm:$0xff] %v4477_v55  ;;  %v1393_v62 = vadd.f32 %v4460_v22, %v1145_v56  ;;  %v3595_v63 = vpop.f32.mrb[42].mxu1  ;;  %1826 = vmatmul.mubr.f32.gmra.mrb[54].mxu1 %v1490_v54  ;;  %v4503_v30 = vld [vmem:[#allocation2 + $0x21] sm:$0xff]  ;;  %v4516_v43 = vld [vmem:[#allocation2 + $0x29] sm:$0xff]  ;;  %v3812_v54 = vpack.c.bf16 %v1936_v49, %v1935_v48  ;;  %v3814_v56 = vpack.c.bf16 %v1954_v52, %v1953_v51 }
 0x167   : > { %v1108_v3 = vpop.f32.mrb[43].mxu1  ;;  %1671 = vmatmul.mubr.f32.gmra.mrb[18].mxu0 %v1552_v0  ;;  %1830 = vmatprep.mubr.f32.mxu1 %v4468_v32  ;;  %v2357_v60 = vld [vmem:[#allocation3 + $0x400] sm:$0xff]  ;;  %v2371_v49 = vld [vmem:[#allocation3 + $0x470] sm:$0xff]  ;;  %v2372_v51 = vld [vmem:[#allocation3 + $0x478] sm:$0xff] }
 0x168   : > { %v4484_v5 = vmax.f32 %v1393_v62, 0.0  ;;  %v1147_v6 = vadd.f32 %v1108_v3, %v4451_v11  ;;  %1675 = vmatprep.mubr.f32.mxu0 %v4481_v4  ;;  %3793 = vmatpush3.bf16.msra.mxu0 %v3792_v57  ;;  %v1937_v57 = vld [vmem:[#allocation3 + $0x270] sm:$0xff]  ;;  %v2358_v62 = vld [vmem:[#allocation3 + $0x408] sm:$0xff] }
 0x169   : > { %3795 = vmatprep.subr.bf16.mxu0 %v3794_v58  ;;  %v4507_v34 = vld [vmem:[#allocation2 + $0x37] sm:$0xff]  ;;  %v1938_v58 = vld [vmem:[#allocation3 + $0x278] sm:$0xff]  ;;  %v4543_v1 = vpack.c.bf16 %v2358_v62, %v2357_v60  ;;  %v2573_v52 = vld [vmem:[%s4946_s3] sm:$0xff] }
 0x16a   : > { %1479 = vst [vmem:[#allocation2 + $0x58] sm:$0xff] %v4484_v5  ;;  %v1395_v12 = vadd.f32 %v4460_v22, %v1147_v6  ;;  %v3598_v13 = vpop.f32.mrb[44].mxu1  ;;  %1831 = vmatmul.mubr.f32.gmra.mrb[56].mxu1 %v4481_v4  ;;  %v4527_v50 = vld [vmem:[#allocation2 + $0x31] sm:$0xff]  ;;  %v4535_v59 = vld [vmem:[#allocation2 + $0x39] sm:$0xff]  ;;  %v3816_v0 = vpack.c.bf16 %v1938_v58, %v1937_v57  ;;  %v4010_v58 = vld [vmem:[#allocation2 + $0x8] sm:$0xff] }
 0x16b   : > { %v1118_v11 = vpop.f32.mrb[45].mxu1  ;;  %1676 = vmatmul.mubr.f32.gmra.mrb[20].mxu0 %v4490_v14  ;;  %1835 = vmatprep.mubr.f32.mxu1 %v4110_v61  ;;  %v2575_v57 = vld [vmem:[%s4946_s3 + $0x10] sm:$0xff]  ;;  %v2560_v62 = vld [vmem:[%s4237_s16 + $0x18] sm:$0xff] }
 0x16c   : > { %v4497_v20 = vmax.f32 %v1395_v12, 0.0  ;;  %v1149_v21 = vadd.f32 %v1118_v11, %v4453_v15  ;;  %1680 = vmatprep.mubr.f32.mxu0 %v4494_v18  ;;  %3797 = vmatpush3.bf16.msra.mxu0 %v3796_v7 }
 0x16d   : > { %3799 = vmatprep.subr.bf16.mxu0 %v3798_v8  ;;  %v4531_v53 = vld [vmem:[#allocation2 + $0x47] sm:$0xff]  ;;  %v4539_v63 = vld [vmem:[#allocation2 + $0x4f] sm:$0xff] }
 0x16e   : > { %1481 = vst [vmem:[#allocation2 + $0x68] sm:$0xff] %v4497_v20  ;;  %v1397_v28 = vadd.f32 %v4460_v22, %v1149_v21  ;;  %v3601_v29 = vpop.f32.mrb[46].mxu1  ;;  %1836 = vmatmul.mubr.f32.gmra.mrb[58].mxu1 %v4494_v18  ;;  %v4545_v2 = vld [vmem:[#allocation2 + $0x41] sm:$0xff]  ;;  %v4554_v6 = vld [vmem:[#allocation2 + $0x49] sm:$0xff] }
 0x16f   : > { %v1128_v15 = vpop.f32.mrb[47].mxu1  ;;  %1681 = vmatmul.mubr.f32.gmra.mrb[22].mxu0 %v4503_v30  ;;  %1840 = vmatprep.mubr.f32.mxu1 %v4472_v41  ;;  %v2360_v29 = vld [vmem:[#allocation3 + $0x418] sm:$0xff] }
 0x170   : > { %v4510_v35 = vmax.f32 %v1397_v28, 0.0  ;;  %v1151_v36 = vadd.f32 %v1128_v15, %v4455_v19  ;;  %1685 = vmatprep.mubr.f32.mxu0 %v4507_v34  ;;  %3801 = vmatpush3.bf16.msra.mxu0 %v3800_v23  ;;  %v4520_v19 = vld [vmem:[#allocation2 + $0x3f] sm:$0xff] }
 0x171   : > { %3803 = vmatprep.subr.bf16.mxu0 %v3802_v24  ;;  %v4549_v3 = vld [vmem:[#allocation2 + $0x57] sm:$0xff]  ;;  %v4558_v7 = vld [vmem:[#allocation2 + $0x5f] sm:$0xff] }
 0x172   : > { %1483 = vst [vmem:[#allocation2 + $0x78] sm:$0xff] %v4510_v35  ;;  %v1399_v42 = vadd.f32 %v4460_v22, %v1151_v36  ;;  %1841 = vmatmul.mubr.f32.gmra.mrb[60].mxu1 %v4507_v34  ;;  %v3810_v22 = vpack.c.bf16 %v1952_v45, %v1951_v44  ;;  %v4562_v8 = vld [vmem:[#allocation2 + $0x51] sm:$0xff]  ;;  %v4570_v10 = vld [vmem:[#allocation2 + $0x59] sm:$0xff]  ;;  %v2364_v36 = vld [vmem:[#allocation3 + $0x438] sm:$0xff] }
 0x173   : > { %1686 = vmatmul.mubr.f32.gmra.mrb[24].mxu0 %v4516_v43  ;;  %1845 = vmatprep.mubr.f32.mxu1 %v4110_v61  ;;  %v2359_v28 = vld [vmem:[#allocation3 + $0x410] sm:$0xff]  ;;  %v2368_v44 = vld [vmem:[#allocation3 + $0x458] sm:$0xff] }
 0x174   : > { %v4523_v46 = vmax.f32 %v1399_v42, 0.0  ;;  %1690 = vmatprep.mubr.f32.mxu0 %v4520_v19  ;;  %3805 = vmatpush3.bf16.msra.mxu0 %v3804_v37  ;;  %v2363_v15 = vld [vmem:[#allocation3 + $0x430] sm:$0xff] }
 0x175   : > { %3807 = vmatprep.subr.bf16.mxu0 %v3806_v38  ;;  %v4566_v9 = vld [vmem:[#allocation2 + $0x67] sm:$0xff]  ;;  %v4574_v12 = vld [vmem:[#allocation2 + $0x6f] sm:$0xff] }
 0x176   : > { %1485 = vst [vmem:[#allocation2 + $0x88] sm:$0xff] %v4523_v46  ;;  %1846 = vmatmul.mubr.f32.gmra.mrb[62].mxu1 %v4520_v19  ;;  %v4578_v13 = vld [vmem:[#allocation2 + $0x61] sm:$0xff]  ;;  %v4586_v17 = vld [vmem:[#allocation2 + $0x69] sm:$0xff] }
 0x177   : > { %1691 = vmatmul.mubr.f32.gmra.mrb[26].mxu0 %v4527_v50  ;;  %1850 = vmatprep.mubr.f32.mxu1 %v4477_v55  ;;  %v2367_v42 = vld [vmem:[#allocation3 + $0x450] sm:$0xff] }
 0x178   : > { %1695 = vmatprep.mubr.f32.mxu0 %v4531_v53  ;;  %3809 = vmatpush3.bf16.msra.mxu0 %v3808_v47  ;;  %v2369_v47 = vld [vmem:[#allocation3 + $0x460] sm:$0xff] }
 0x179   : > { %3811 = vmatprep.subr.bf16.mxu0 %v3810_v22  ;;  %v4582_v16 = vld [vmem:[#allocation2 + $0x77] sm:$0xff]  ;;  %v4590_v11 = vld [vmem:[#allocation2 + $0x7f] sm:$0xff] }
 0x17a   : > { %1851 = vmatmul.mubr.f32.gmra.mrb[64].mxu1 %v4531_v53  ;;  %v4594_v21 = vld [vmem:[#allocation2 + $0x71] sm:$0xff]  ;;  %v4602_v24 = vld [vmem:[#allocation2 + $0x79] sm:$0xff] }
 0x17b   : > { %1696 = vmatmul.mubr.f32.gmra.mrb[28].mxu0 %v4535_v59  ;;  %1855 = vmatprep.mubr.f32.mxu1 %v4110_v61  ;;  %v2370_v22 = vld [vmem:[#allocation3 + $0x468] sm:$0xff] }
 0x17c   : > { %1700 = vmatprep.mubr.f32.mxu0 %v4539_v63  ;;  %3813 = vmatpush3.bf16.msra.mxu0 %v3812_v54  ;;  %v3874_v48 = vpack.c.bf16 %v2370_v22, %v2369_v47 }
 0x17d   : > { %3815 = vmatprep.subr.bf16.mxu0 %v3814_v56  ;;  %v4598_v23 = vld [vmem:[#allocation2 + $0x87] sm:$0xff]  ;;  %v4606_v25 = vld [vmem:[#allocation2 + $0x8f] sm:$0xff] }
 0x17e   : > { %1856 = vmatmul.mubr.f32.gmra.mrb[66].mxu1 %v4539_v63  ;;  %v4610_v26 = vld [vmem:[#allocation2 + $0x81] sm:$0xff]  ;;  %v1922_v56 = vld [vmem:[#allocation2 + $0x91] sm:$0xff] }
 0x17f   : > { %1701 = vmatmul.mubr.f32.gmra.mrb[30].mxu0 %v4545_v2  ;;  %1860 = vmatprep.mubr.f32.mxu1 %v4484_v5 }
 0x180   : > { %1705 = vmatprep.mubr.f32.mxu0 %v4549_v3  ;;  %3817 = vmatpush3.bf16.msra.mxu0 %v3816_v0  ;;  %v2562_v0 = vld [vmem:[%s4237_s16 + $0x28] sm:$0xff] }
 0x181   : > { %3851 = vmatprep.subr.bf16.mxu0 %v4543_v1 }
 0x182   : > { %1861 = vmatmul.mubr.f32.gmra.mrb[68].mxu1 %v4549_v3 }
 0x183   : > { %1706 = vmatmul.mubr.f32.gmra.mrb[32].mxu0 %v4554_v6  ;;  %1865 = vmatprep.mubr.f32.mxu1 %v4110_v61 }
 0x184   : > { %1710 = vmatprep.mubr.f32.mxu0 %v4558_v7 }
 0x186   : > { %1866 = vmatmul.mubr.f32.gmra.mrb[70].mxu1 %v4558_v7 }
 0x187   : > { %1711 = vmatmul.mubr.f32.gmra.mrb[34].mxu0 %v4562_v8  ;;  %1870 = vmatprep.mubr.f32.mxu1 %v4497_v20 }
 0x188   : > { %1715 = vmatprep.mubr.f32.mxu0 %v4566_v9 }
 0x18a   : > { %1871 = vmatmul.mubr.f32.gmra.mrb[72].mxu1 %v4566_v9 }
 0x18b   : > { %1716 = vmatmul.mubr.f32.gmra.mrb[36].mxu0 %v4570_v10  ;;  %1875 = vmatprep.mubr.f32.mxu1 %v4110_v61 }
 0x18c   : > { %1720 = vmatprep.mubr.f32.mxu0 %v4574_v12 }
 0x18e   : > { %1876 = vmatmul.mubr.f32.gmra.mrb[74].mxu1 %v4574_v12 }
 0x18f   : > { %1721 = vmatmul.mubr.f32.gmra.mrb[38].mxu0 %v4578_v13  ;;  %1880 = vmatprep.mubr.f32.mxu1 %v4510_v35 }
 0x190   : > { %1725 = vmatprep.mubr.f32.mxu0 %v4582_v16 }
 0x192   : > { %1881 = vmatmul.mubr.f32.gmra.mrb[76].mxu1 %v4582_v16 }
 0x193   : > { %1726 = vmatmul.mubr.f32.gmra.mrb[40].mxu0 %v4586_v17  ;;  %1885 = vmatprep.mubr.f32.mxu1 %v4110_v61 }
 0x194   : > { %1730 = vmatprep.mubr.f32.mxu0 %v4590_v11 }
 0x196   : > { %1886 = vmatmul.mubr.f32.gmra.mrb[78].mxu1 %v4590_v11 }
 0x197   : > { %1731 = vmatmul.mubr.f32.gmra.mrb[42].mxu0 %v4594_v21  ;;  %2244 = vmatprep.mubr.f32.mxu1 %v4468_v32 }
 0x198   : > { %1735 = vmatprep.mubr.f32.mxu0 %v4598_v23 }
 0x19a   : > { %2245 = vmatmul.mubr.f32.vlgmr.msra.gmra.mrb[80].mxu1 %v4481_v4  ;;  %v3854_v4 = vpack.c.bf16 %v2360_v29, %v2359_v28 }
 0x19b   : > { %1736 = vmatmul.mubr.f32.gmra.mrb[44].mxu0 %v4602_v24  ;;  %2249 = vmatprep.mubr.f32.mxu1 %v4110_v61 }
 0x19c   : > { %1740 = vmatprep.mubr.f32.mxu0 %v4606_v25 }
 0x19e   : > { %2250 = vmatmul.mubr.f32.gmra.mrb[82].mxu1 %v4494_v18  ;;  %v3858_v18 = vpack.c.bf16 %v2362_v33, %v2361_v31 }
 0x19f   : > { %1741 = vmatmul.mubr.f32.gmra.mrb[46].mxu0 %v4610_v26  ;;  %2254 = vmatprep.mubr.f32.mxu1 %v4472_v41 }
 0x1a0   : > { %2019 = vmatprep.mubr.f32.mxu0 %v4490_v14  ;;  %v3214_v14 = vpop.f32.mrb[48].mxu1 }
 0x1a1   : > { %v3215_v37 = vpop.f32.mrb[49].mxu1 }
 0x1a2   : > { %2255 = vmatmul.mubr.f32.gmra.mrb[84].mxu1 %v4507_v34  ;;  %v2366_v34 = vld [vmem:[#allocation3 + $0x448] sm:$0xff]  ;;  %v4628_v38 = vadd.f32 %v3215_v37, %v3214_v14  ;;  %v3217_v40 = vpop.f32.mrb[50].mxu1 }
 0x1a3   : > { %2020 = vmatmul.mubr.f32.vlgmr.msra.gmra.mrb[48].mxu0 %v4463_v27  ;;  %2259 = vmatprep.mubr.f32.mxu1 %v4110_v61  ;;  %v3862_v27 = vpack.c.bf16 %v2364_v36, %v2363_v15  ;;  %v3218_v45 = vpop.f32.mrb[51].mxu1 }
 0x1a4   : > { %2024 = vmatprep.mubr.f32.mxu0 %v4503_v30  ;;  %3853 = vmatpush3.bf16.msra.mxu0 %v4543_v1  ;;  %v2365_v30 = vld [vmem:[#allocation3 + $0x440] sm:$0xff] }
 0x1a5   : > { %3855 = vmatprep.subr.bf16.mxu0 %v3854_v4  ;;  %v3866_v39 = vpack.c.bf16 %v2366_v34, %v2365_v30  ;;  %v2563_v1 = vld [vmem:[%s4237_s16 + $0x30] sm:$0xff] }
 0x1a6   : > { %2260 = vmatmul.mubr.f32.gmra.mrb[86].mxu1 %v4520_v19  ;;  %v3870_v19 = vpack.c.bf16 %v2368_v44, %v2367_v42 }
 0x1a7   : > { %2025 = vmatmul.mubr.f32.gmra.mrb[50].mxu0 %v4110_v61  ;;  %2264 = vmatprep.mubr.f32.mxu1 %v4477_v55 }
 0x1a8   : > { %2029 = vmatprep.mubr.f32.mxu0 %v4516_v43  ;;  %3857 = vmatpush3.bf16.msra.mxu0 %v3854_v4 }
 0x1a9   : > { %3859 = vmatprep.subr.bf16.mxu0 %v3858_v18 }
 0x1aa   : > { %2265 = vmatmul.mubr.f32.gmra.mrb[88].mxu1 %v4531_v53  ;;  %v2574_v53 = vld [vmem:[%s4946_s3 + $0x8] sm:$0xff] }
 0x1ab   : > { %2030 = vmatmul.mubr.f32.gmra.mrb[52].mxu0 %v4468_v32  ;;  %2269 = vmatprep.mubr.f32.mxu1 %v4110_v61  ;;  %v4634_v32 = vadd.f32 %v3218_v45, %v3217_v40  ;;  %v3882_v54 = vpack.c.bf16 %v2574_v53, %v2573_v52 }
 0x1ac   : > { %2034 = vmatprep.mubr.f32.mxu0 %v4527_v50  ;;  %3861 = vmatpush3.bf16.msra.mxu0 %v3858_v18 }
 0x1ad   : > { %3863 = vmatprep.subr.bf16.mxu0 %v3862_v27 }
 0x1ae   : > { %2270 = vmatmul.mubr.f32.gmra.mrb[90].mxu1 %v4539_v63  ;;  %v2561_v63 = vld [vmem:[%s4237_s16 + $0x20] sm:$0xff] }
 0x1af   : > { %2035 = vmatmul.mubr.f32.gmra.mrb[54].mxu0 %v4110_v61  ;;  %2274 = vmatprep.mubr.f32.mxu1 %v4484_v5 }
 0x1b0   : > { %2039 = vmatprep.mubr.f32.mxu0 %v4535_v59  ;;  %3865 = vmatpush3.bf16.msra.mxu0 %v3862_v27 }
 0x1b1   : > { %3867 = vmatprep.subr.bf16.mxu0 %v3866_v39 }
 0x1b2   : > { %2275 = vmatmul.mubr.f32.gmra.mrb[92].mxu1 %v4549_v3  ;;  %v2565_v3 = vld [vmem:[%s4237_s16 + $0x40] sm:$0xff] }
 0x1b3   : > { %2040 = vmatmul.mubr.f32.gmra.mrb[56].mxu0 %v4472_v41  ;;  %2279 = vmatprep.mubr.f32.mxu1 %v4110_v61  ;;  %v3878_v41 = vpack.c.bf16 %v2372_v51, %v2371_v49 }
 0x1b4   : > { %2044 = vmatprep.mubr.f32.mxu0 %v4545_v2  ;;  %3869 = vmatpush3.bf16.msra.mxu0 %v3866_v39 }
 0x1b5   : > { %3871 = vmatprep.subr.bf16.mxu0 %v3870_v19 }
 0x1b6   : > { %2280 = vmatmul.mubr.f32.gmra.mrb[94].mxu1 %v4558_v7  ;;  %v2567_v7 = vld [vmem:[%s4237_s16 + $0x50] sm:$0xff] }
 0x1b7   : > { %2045 = vmatmul.mubr.f32.gmra.mrb[58].mxu0 %v4110_v61  ;;  %2284 = vmatprep.mubr.f32.mxu1 %v4497_v20 }
 0x1b8   : > { %2049 = vmatprep.mubr.f32.mxu0 %v4554_v6  ;;  %3873 = vmatpush3.bf16.msra.mxu0 %v3870_v19 }
 0x1b9   : > { %3875 = vmatprep.subr.bf16.mxu0 %v3874_v48 }
 0x1ba   : > { %2285 = vmatmul.mubr.f32.gmra.mrb[96].mxu1 %v4566_v9  ;;  %v2569_v9 = vld [vmem:[%s4237_s16 + $0x60] sm:$0xff] }
 0x1bb   : > { %2050 = vmatmul.mubr.f32.gmra.mrb[60].mxu0 %v4477_v55  ;;  %2289 = vmatprep.mubr.f32.mxu1 %v4110_v61  ;;  %v2130_v55 = vld [vmem:[#allocation2 + $0x97] sm:$0xff] }
 0x1bc   : > { %2054 = vmatprep.mubr.f32.mxu0 %v4562_v8  ;;  %3877 = vmatpush3.bf16.msra.mxu0 %v3874_v48 }
 0x1bd   : > { %3879 = vmatprep.subr.bf16.mxu0 %v3878_v41 }
 0x1be   : > { %2290 = vmatmul.mubr.f32.gmra.mrb[98].mxu1 %v4574_v12  ;;  %v2571_v12 = vld [vmem:[%s4237_s16 + $0x70] sm:$0xff] }
 0x1bf   : > { %2055 = vmatmul.mubr.f32.gmra.mrb[62].mxu0 %v4110_v61  ;;  %2294 = vmatprep.mubr.f32.mxu1 %v4510_v35 }
 0x1c0   : > { %2059 = vmatprep.mubr.f32.mxu0 %v4570_v10  ;;  %3881 = vmatpush3.bf16.msra.mxu0 %v3878_v41 }
 0x1c1   : > { %3883 = vmatprep.subr.bf16.mxu0 %v3882_v54 }
 0x1c2   : > { %2295 = vmatmul.mubr.f32.gmra.mrb[100].mxu1 %v4582_v16 }
 0x1c3   : > { %2060 = vmatmul.mubr.f32.gmra.mrb[64].mxu0 %v4484_v5  ;;  %2299 = vmatprep.mubr.f32.mxu1 %v4110_v61  ;;  %v2131_v5 = vld [vmem:[#allocation2 + $0x9f] sm:$0xff] }
 0x1c4   : > { %2064 = vmatprep.mubr.f32.mxu0 %v4578_v13 }
 0x1c6   : > { %2300 = vmatmul.mubr.f32.gmra.mrb[102].mxu1 %v4590_v11 }
 0x1c7   : > { %2065 = vmatmul.mubr.f32.gmra.mrb[66].mxu0 %v4110_v61  ;;  %2304 = vmatprep.mubr.f32.mxu1 %v4523_v46 }
 0x1c8   : > { %2069 = vmatprep.mubr.f32.mxu0 %v4586_v17 }
 0x1ca   : > { %2305 = vmatmul.mubr.f32.gmra.mrb[104].mxu1 %v4598_v23 }
 0x1cb   : > { %2070 = vmatmul.mubr.f32.gmra.mrb[68].mxu0 %v4497_v20  ;;  %2309 = vmatprep.mubr.f32.mxu1 %v4110_v61  ;;  %v1921_v20 = vld [vmem:[#allocation2 + $0x89] sm:$0xff] }
 0x1cc   : > { %2074 = vmatprep.mubr.f32.mxu0 %v4594_v21 }
 0x1ce   : > { %2310 = vmatmul.mubr.f32.gmra.mrb[106].mxu1 %v4606_v25 }
 0x1cf   : > { %2075 = vmatmul.mubr.f32.gmra.mrb[70].mxu0 %v4110_v61  ;;  %2314 = vmatprep.mubr.f32.mxu1 %v4110_v61 }
 0x1d0   : > { %2079 = vmatprep.mubr.f32.mxu0 %v4602_v24 }
 0x1d2   : > { %2315 = vmatmul.mubr.f32.gmra.mrb[108].mxu1 %v2130_v55 }
 0x1d3   : > { %2080 = vmatmul.mubr.f32.gmra.mrb[72].mxu0 %v4510_v35  ;;  %2319 = vmatprep.mubr.f32.mxu1 %v4110_v61  ;;  %v2576_v35 = vld [vmem:[%s4946_s3 + $0x18] sm:$0xff] }
 0x1d4   : > { %2084 = vmatprep.mubr.f32.mxu0 %v4610_v26  ;;  %v3886_v60 = vpack.c.bf16 %v2576_v35, %v2575_v57 }
 0x1d6   : > { %2320 = vmatmul.mubr.f32.gmra.mrb[110].mxu1 %v2131_v5 }
 0x1d7   : > { %2085 = vmatmul.mubr.f32.gmra.mrb[74].mxu0 %v4110_v61  ;;  %v2355_v61 = vld [vmem:[#allocation2 + $0x99] sm:$0xff] }
 0x1d8   : > { %2089 = vmatprep.mubr.f32.mxu0 %v1921_v20 }
 0x1db   : > { %2090 = vmatmul.mubr.f32.gmra.mrb[76].mxu0 %v4523_v46  ;;  %v2557_v46 = vld [vmem:[%s4237_s16] sm:$0xff] }
 0x1dc   : > { %2094 = vmatprep.mubr.f32.mxu0 %v1922_v56 }
 0x1df   : > { %2095 = vmatmul.mubr.f32.gmra.mrb[78].mxu0 %v4010_v58 }
 0x1e0   : > { %3634 = vmatprep.mubr.f32.mxu0 %v4516_v43  ;;  %v2356_v43 = vld [vmem:[#allocation2 + $0xa1] sm:$0xff] }
 0x1e3   : > { %3635 = vmatmul.mubr.f32.vlgmr.msra.gmra.mrb[80].mxu0 %v4527_v50  ;;  %v2558_v50 = vld [vmem:[%s4237_s16 + $0x8] sm:$0xff] }
 0x1e4   : > { %3637 = vmatprep.mubr.f32.mxu0 %v4535_v59  ;;  %3885 = vmatpush3.bf16.msra.mxu0 %v3882_v54  ;;  %v2559_v59 = vld [vmem:[%s4237_s16 + $0x10] sm:$0xff] }
 0x1e5   : > { %3887 = vmatprep.subr.bf16.mxu0 %v3886_v60 }
 0x1e7   : > { %3638 = vmatmul.mubr.f32.gmra.mrb[82].mxu0 %v4545_v2  ;;  %v2564_v2 = vld [vmem:[%s4237_s16 + $0x38] sm:$0xff] }
 0x1e8   : > { %3640 = vmatprep.mubr.f32.mxu0 %v4554_v6  ;;  %3889 = vmatpush3.bf16.msra.mxu0 %v3886_v60  ;;  %v2566_v6 = vld [vmem:[%s4237_s16 + $0x48] sm:$0xff] }
 0x1eb   : > { %3641 = vmatmul.mubr.f32.gmra.mrb[84].mxu0 %v4562_v8  ;;  %v2568_v8 = vld [vmem:[%s4237_s16 + $0x58] sm:$0xff] }
 0x1ec   : > { %3643 = vmatprep.mubr.f32.mxu0 %v4570_v10  ;;  %v2570_v10 = vld [vmem:[%s4237_s16 + $0x68] sm:$0xff] }
 0x1ef   : > { %3644 = vmatmul.mubr.f32.gmra.mrb[86].mxu0 %v4578_v13  ;;  %v2572_v13 = vld [vmem:[%s4237_s16 + $0x78] sm:$0xff]  ;;  %s4045_s16 = scalar_lea.vmem %s4044_s12, 4096 }
 0x1f0   : > { %3646 = vmatprep.mubr.f32.mxu0 %v4586_v17  ;;  %p4047_p3 = scmp.lt.s32.totalorder %s4045_s16, %s4039_s14 }
 0x1f2   : > { %p4048_p4 = por %p4047_p3, %p4046_p2 }
 0x1f3   : > { %3647 = vmatmul.mubr.f32.gmra.mrb[88].mxu0 %v4594_v21 }
 0x1f4   : > { %3649 = vmatprep.mubr.f32.mxu0 %v4602_v24  ;;  %p4049_p7 = pnand %p4048_p4, %p4042_p12 }
 0x1f7   : > { %3650 = vmatmul.mubr.f32.gmra.mrb[90].mxu0 %v4610_v26 }
 0x1f8   : > { %3652 = vmatprep.mubr.f32.mxu0 %v1921_v20 }
 0x1fb   : > { %3653 = vmatmul.mubr.f32.gmra.mrb[92].mxu0 %v1922_v56 }
 0x1fc   : > { %3655 = vmatprep.mubr.f32.mxu0 %v2355_v61 }
 0x1ff   : > { %3656 = vmatmul.mubr.f32.gmra.mrb[94].mxu0 %v2356_v43 }
 0x200   : > { %3666 = vmatprep.mubr.msk.f32.mxu0 %vm306_vm0, %v2557_v46 }
 0x203   : > { %3667 = vmatmul.mubr.msk.f32.vlgmr.msra.gmra.mrb[80].mxu0 %vm306_vm0, %v2558_v50 }
 0x204   : > { %3669 = vmatprep.mubr.msk.f32.mxu0 %vm306_vm0, %v2559_v59 }
 0x207   : > { %3670 = vmatmul.mubr.msk.f32.gmra.mrb[82].mxu0 %vm306_vm0, %v2560_v62 }
 0x208   : > { %3672 = vmatprep.mubr.msk.f32.mxu0 %vm306_vm0, %v2561_v63 }
 0x20b   : > { %3673 = vmatmul.mubr.msk.f32.gmra.mrb[84].mxu0 %vm306_vm0, %v2562_v0 }
 0x20c   : > { %3675 = vmatprep.mubr.msk.f32.mxu0 %vm306_vm0, %v2563_v1 }
 0x20f   : > { %3676 = vmatmul.mubr.msk.f32.gmra.mrb[86].mxu0 %vm306_vm0, %v2564_v2 }
 0x210   : > { %3678 = vmatprep.mubr.msk.f32.mxu0 %vm306_vm0, %v2565_v3 }
 0x213   : > { %3679 = vmatmul.mubr.msk.f32.gmra.mrb[88].mxu0 %vm306_vm0, %v2566_v6 }
 0x214   : > { %3681 = vmatprep.mubr.msk.f32.mxu0 %vm306_vm0, %v2567_v7 }
 0x217   : > { %3682 = vmatmul.mubr.msk.f32.gmra.mrb[90].mxu0 %vm306_vm0, %v2568_v8 }
 0x218   : > { %3684 = vmatprep.mubr.msk.f32.mxu0 %vm306_vm0, %v2569_v9 }
 0x21b   : > { %3685 = vmatmul.mubr.msk.f32.gmra.mrb[92].mxu0 %vm306_vm0, %v2570_v10 }
 0x21c   : > { %3687 = vmatprep.mubr.msk.f32.mxu0 %vm306_vm0, %v2571_v12 }
 0x21f   : > { %3688 = vmatmul.mubr.msk.f32.gmra.mrb[94].mxu0 %vm306_vm0, %v2572_v13 }
 0x235   : > { %v3220_v16 = vpop.f32.mrb[52].mxu1 }
 0x236   : > { %v3134_v17 = vpop.f32.mrb[16].mxu0  ;;  %v3221_v11 = vpop.f32.mrb[53].mxu1 }
 0x237   : > { %v3135_v21 = vpop.f32.mrb[17].mxu0  ;;  %v3222_v23 = vadd.f32 %v3221_v11, %v3220_v16 }
 0x238   : > { %v3136_v24 = vadd.f32 %v3135_v21, %v3134_v17 }
 0x239   : > { %v3223_v25 = vpop.f32.mrb[54].mxu1 }
 0x23a   : > { %v4731_v26 = vadd.f32 %v4628_v38, %v3136_v24  ;;  %v3137_v28 = vpop.f32.mrb[18].mxu0  ;;  %v3224_v29 = vpop.f32.mrb[55].mxu1 }
 0x23b   : > { %v3138_v4 = vpop.f32.mrb[19].mxu0  ;;  %v3225_v31 = vadd.f32 %v3224_v29, %v3223_v25 }
 0x23c   : > { %v3139_v33 = vadd.f32 %v3138_v4, %v3137_v28 }
 0x23d   : > { %v3226_v18 = vpop.f32.mrb[56].mxu1 }
 0x23e   : > { %v4734_v15 = vadd.f32 %v4634_v32, %v3139_v33  ;;  %v3140_v36 = vpop.f32.mrb[20].mxu0  ;;  %v3227_v27 = vpop.f32.mrb[57].mxu1 }
 0x23f   : > { %v3141_v14 = vpop.f32.mrb[21].mxu0  ;;  %v3228_v30 = vadd.f32 %v3227_v27, %v3226_v18 }
 0x240   : > { %v3142_v34 = vadd.f32 %v3141_v14, %v3140_v36 }
 0x241   : > { %v3229_v37 = vpop.f32.mrb[58].mxu1 }
 0x242   : > { %v4736_v39 = vadd.f32 %v3222_v23, %v3142_v34  ;;  %v3143_v40 = vpop.f32.mrb[22].mxu0  ;;  %v3230_v38 = vpop.f32.mrb[59].mxu1 }
 0x243   : > { %v3144_v42 = vpop.f32.mrb[23].mxu0  ;;  %v3231_v44 = vadd.f32 %v3230_v38, %v3229_v37 }
 0x244   : > { %v3145_v45 = vadd.f32 %v3144_v42, %v3143_v40 }
 0x245   : > { %v3232_v19 = vpop.f32.mrb[60].mxu1 }
 0x246   : > { %v4738_v47 = vadd.f32 %v3225_v31, %v3145_v45  ;;  %v3146_v22 = vpop.f32.mrb[24].mxu0  ;;  %v3233_v48 = vpop.f32.mrb[61].mxu1 }
 0x247   : > { %v3147_v32 = vpop.f32.mrb[25].mxu0  ;;  %v3234_v49 = vadd.f32 %v3233_v48, %v3232_v19 }
 0x248   : > { %v3148_v51 = vadd.f32 %v3147_v32, %v3146_v22 }
 0x249   : > { %v3235_v41 = vpop.f32.mrb[62].mxu1 }
 0x24a   : > { %v4740_v52 = vadd.f32 %v3228_v30, %v3148_v51  ;;  %v3149_v53 = vpop.f32.mrb[26].mxu0  ;;  %v3236_v54 = vpop.f32.mrb[63].mxu1 }
 0x24b   : > { %v3150_v55 = vpop.f32.mrb[27].mxu0  ;;  %v3237_v5 = vadd.f32 %v3236_v54, %v3235_v41 }
 0x24c   : > { %v3151_v20 = vadd.f32 %v3150_v55, %v3149_v53 }
 0x24d   : > { %v3238_v56 = vpop.f32.mrb[64].mxu1 }
 0x24e   : > { %v4742_v57 = vadd.f32 %v3231_v44, %v3151_v20  ;;  %v3152_v35 = vpop.f32.mrb[28].mxu0  ;;  %v3239_v58 = vpop.f32.mrb[65].mxu1 }
 0x24f   : > { %v3153_v60 = vpop.f32.mrb[29].mxu0  ;;  %v3240_v61 = vadd.f32 %v3239_v58, %v3238_v56 }
 0x250   : > { %v3154_v43 = vadd.f32 %v3153_v60, %v3152_v35 }
 0x251   : > { %v3241_v46 = vpop.f32.mrb[66].mxu1 }
 0x252   : > { %v4744_v50 = vadd.f32 %v3234_v49, %v3154_v43  ;;  %v3155_v59 = vpop.f32.mrb[30].mxu0  ;;  %v3242_v62 = vpop.f32.mrb[67].mxu1 }
 0x253   : > { %v3156_v63 = vpop.f32.mrb[31].mxu0  ;;  %v3243_v0 = vadd.f32 %v3242_v62, %v3241_v46 }
 0x254   : > { %v3157_v1 = vadd.f32 %v3156_v63, %v3155_v59 }
 0x255   : > { %v3244_v2 = vpop.f32.mrb[68].mxu1 }
 0x256   : > { %v4746_v3 = vadd.f32 %v3237_v5, %v3157_v1  ;;  %v3158_v6 = vpop.f32.mrb[32].mxu0  ;;  %v3245_v7 = vpop.f32.mrb[69].mxu1 }
 0x257   : > { %v3159_v8 = vpop.f32.mrb[33].mxu0  ;;  %v3246_v9 = vadd.f32 %v3245_v7, %v3244_v2 }
 0x258   : > { %v3160_v10 = vadd.f32 %v3159_v8, %v3158_v6 }
 0x259   : > { %v3247_v12 = vpop.f32.mrb[70].mxu1 }
 0x25a   : > { %v4748_v13 = vadd.f32 %v3240_v61, %v3160_v10  ;;  %v3161_v16 = vpop.f32.mrb[34].mxu0  ;;  %v3248_v17 = vpop.f32.mrb[71].mxu1 }
 0x25b   : > { %v3162_v11 = vpop.f32.mrb[35].mxu0  ;;  %v3249_v21 = vadd.f32 %v3248_v17, %v3247_v12 }
 0x25c   : > { %v3163_v23 = vadd.f32 %v3162_v11, %v3161_v16 }
 0x25d   : > { %v3250_v24 = vpop.f32.mrb[72].mxu1 }
 0x25e   : > { %v4750_v25 = vadd.f32 %v3243_v0, %v3163_v23  ;;  %v3164_v28 = vpop.f32.mrb[36].mxu0  ;;  %v3251_v29 = vpop.f32.mrb[73].mxu1 }
 0x25f   : > { %v3165_v4 = vpop.f32.mrb[37].mxu0  ;;  %v3252_v31 = vadd.f32 %v3251_v29, %v3250_v24 }
 0x260   : > { %v3166_v33 = vadd.f32 %v3165_v4, %v3164_v28 }
 0x261   : > { %v3253_v18 = vpop.f32.mrb[74].mxu1 }
 0x262   : > { %v4752_v36 = vadd.f32 %v3246_v9, %v3166_v33  ;;  %v3167_v27 = vpop.f32.mrb[38].mxu0  ;;  %v3254_v14 = vpop.f32.mrb[75].mxu1 }
 0x263   : > { %v3168_v30 = vpop.f32.mrb[39].mxu0  ;;  %v3255_v34 = vadd.f32 %v3254_v14, %v3253_v18 }
 0x264   : > { %v3169_v37 = vadd.f32 %v3168_v30, %v3167_v27 }
 0x265   : > { %v3256_v40 = vpop.f32.mrb[76].mxu1 }
 0x266   : > { %v4754_v38 = vadd.f32 %v3249_v21, %v3169_v37  ;;  %v3170_v42 = vpop.f32.mrb[40].mxu0  ;;  %v3257_v44 = vpop.f32.mrb[77].mxu1 }
 0x267   : > { %v3171_v45 = vpop.f32.mrb[41].mxu0  ;;  %v3258_v19 = vadd.f32 %v3257_v44, %v3256_v40 }
 0x268   : > { %v3172_v22 = vadd.f32 %v3171_v45, %v3170_v42 }
 0x269   : > { %v3259_v48 = vpop.f32.mrb[78].mxu1 }
 0x26a   : > { %v4756_v32 = vadd.f32 %v3252_v31, %v3172_v22  ;;  %v3173_v49 = vpop.f32.mrb[42].mxu0  ;;  %v3260_v51 = vpop.f32.mrb[79].mxu1 }
 0x26b   : > { %v3174_v41 = vpop.f32.mrb[43].mxu0  ;;  %v3261_v53 = vadd.f32 %v3260_v51, %v3259_v48 }
 0x26c   : > { %v3175_v54 = vadd.f32 %v3174_v41, %v3173_v49 }
 0x26d   : > { %v3374_v55 = vpop.f32.mrb[80].mxu1 }
 0x26e   : > { %v4758_v5 = vadd.f32 %v3255_v34, %v3175_v54  ;;  %v3176_v20 = vpop.f32.mrb[44].mxu0  ;;  %v3375_v56 = vpop.f32.mrb[81].mxu1 }
 0x26f   : > { %v3177_v35 = vpop.f32.mrb[45].mxu0  ;;  %v3376_v58 = vadd.f32 %v3375_v56, %v3374_v55 }
 0x270   : > { %v3178_v60 = vadd.f32 %v3177_v35, %v3176_v20 }
 0x271   : > { %v3377_v61 = vpop.f32.mrb[82].mxu1 }
 0x272   : > { %v4760_v43 = vadd.f32 %v3258_v19, %v3178_v60  ;;  %v3179_v46 = vpop.f32.mrb[46].mxu0  ;;  %v3378_v59 = vpop.f32.mrb[83].mxu1 }
 0x273   : > { %v3180_v62 = vpop.f32.mrb[47].mxu0  ;;  %v3379_v63 = vadd.f32 %v3378_v59, %v3377_v61 }
 0x274   : > { %v3181_v0 = vadd.f32 %v3180_v62, %v3179_v46 }
 0x275   : > { %v3380_v1 = vpop.f32.mrb[84].mxu1 }
 0x276   : > { %v4762_v2 = vadd.f32 %v3261_v53, %v3181_v0  ;;  %v3294_v6 = vpop.f32.mrb[48].mxu0  ;;  %v3381_v7 = vpop.f32.mrb[85].mxu1 }
 0x277   : > { %v3295_v8 = vpop.f32.mrb[49].mxu0  ;;  %v3382_v9 = vadd.f32 %v3381_v7, %v3380_v1 }
 0x278   : > { %v3296_v10 = vadd.f32 %v3295_v8, %v3294_v6 }
 0x279   : > { %v3383_v12 = vpop.f32.mrb[86].mxu1 }
 0x27a   : > { %v2100_v16 = vadd.f32 %v3296_v10, %v4731_v26  ;;  %v3297_v17 = vpop.f32.mrb[50].mxu0  ;;  %v3384_v11 = vpop.f32.mrb[87].mxu1 }
 0x27b   : > { %v3298_v21 = vpop.f32.mrb[51].mxu0  ;;  %v3385_v23 = vadd.f32 %v3384_v11, %v3383_v12 }
 0x27c   : > { %v3299_v24 = vadd.f32 %v3298_v21, %v3297_v17  ;;  %v4765_v28 = vadd.f32 %v3376_v58, %v2100_v16 }
 0x27d   : > { %v3386_v29 = vpop.f32.mrb[88].mxu1 }
 0x27e   : > { %v2101_v4 = vadd.f32 %v3299_v24, %v4734_v15  ;;  %v3300_v31 = vpop.f32.mrb[52].mxu0  ;;  %v3387_v33 = vpop.f32.mrb[89].mxu1 }
 0x27f   : > { %v3301_v18 = vpop.f32.mrb[53].mxu0  ;;  %v3388_v27 = vadd.f32 %v3387_v33, %v3386_v29 }
 0x280   : > { %v3302_v14 = vadd.f32 %v3301_v18, %v3300_v31  ;;  %v4768_v30 = vadd.f32 %v3379_v63, %v2101_v4 }
 0x281   : > { %v3389_v34 = vpop.f32.mrb[90].mxu1 }
 0x282   : > { %v2102_v26 = vadd.f32 %v3302_v14, %v4736_v39  ;;  %v3303_v37 = vpop.f32.mrb[54].mxu0  ;;  %v3390_v40 = vpop.f32.mrb[91].mxu1 }
 0x283   : > { %v3304_v42 = vpop.f32.mrb[55].mxu0  ;;  %v3391_v44 = vadd.f32 %v3390_v40, %v3389_v34 }
 0x284   : > { %v4771_v45 = vadd.f32 %v3382_v9, %v2102_v26  ;;  %v3305_v19 = vadd.f32 %v3304_v42, %v3303_v37 }
 0x285   : > { %v3392_v22 = vpop.f32.mrb[92].mxu1 }
 0x286   : > { %v2103_v15 = vadd.f32 %v3305_v19, %v4738_v47  ;;  %v3306_v48 = vpop.f32.mrb[56].mxu0  ;;  %v3393_v49 = vpop.f32.mrb[93].mxu1 }
 0x287   : > { %v3307_v51 = vpop.f32.mrb[57].mxu0  ;;  %v3394_v41 = vadd.f32 %v3393_v49, %v3392_v22 }
 0x288   : > { %v4774_v53 = vadd.f32 %v3385_v23, %v2103_v15  ;;  %v3308_v54 = vadd.f32 %v3307_v51, %v3306_v48 }
 0x289   : > { %v3395_v55 = vpop.f32.mrb[94].mxu1 }
 0x28a   : > { %v2104_v39 = vadd.f32 %v3308_v54, %v4740_v52  ;;  %v3309_v20 = vpop.f32.mrb[58].mxu0  ;;  %v3396_v56 = vpop.f32.mrb[95].mxu1 }
 0x28b   : > { %v3310_v35 = vpop.f32.mrb[59].mxu0  ;;  %v3397_v58 = vadd.f32 %v3396_v56, %v3395_v55 }
 0x28c   : > { %v4777_v60 = vadd.f32 %v3388_v27, %v2104_v39  ;;  %v3311_v61 = vadd.f32 %v3310_v35, %v3309_v20 }
 0x28d   : > { %v3398_v46 = vpop.f32.mrb[96].mxu1 }
 0x28e   : > { %v2105_v47 = vadd.f32 %v3311_v61, %v4742_v57  ;;  %v3312_v59 = vpop.f32.mrb[60].mxu0  ;;  %v3399_v62 = vpop.f32.mrb[97].mxu1 }
 0x28f   : > { %v3313_v63 = vpop.f32.mrb[61].mxu0  ;;  %v3400_v0 = vadd.f32 %v3399_v62, %v3398_v46 }
 0x290   : > { %v4780_v1 = vadd.f32 %v3391_v44, %v2105_v47  ;;  %v3314_v6 = vadd.f32 %v3313_v63, %v3312_v59 }
 0x291   : > { %v3401_v7 = vpop.f32.mrb[98].mxu1 }
 0x292   : > { %v2106_v52 = vadd.f32 %v3314_v6, %v4744_v50  ;;  %v3315_v8 = vpop.f32.mrb[62].mxu0  ;;  %v3402_v9 = vpop.f32.mrb[99].mxu1 }
 0x293   : > { %v3316_v10 = vpop.f32.mrb[63].mxu0  ;;  %v3403_v12 = vadd.f32 %v3402_v9, %v3401_v7 }
 0x294   : > { %v4783_v16 = vadd.f32 %v3394_v41, %v2106_v52  ;;  %v3317_v17 = vadd.f32 %v3316_v10, %v3315_v8 }
 0x295   : > { %v3404_v11 = vpop.f32.mrb[100].mxu1 }
 0x296   : > { %v2107_v57 = vadd.f32 %v3317_v17, %v4746_v3  ;;  %v3318_v21 = vpop.f32.mrb[64].mxu0  ;;  %v3405_v23 = vpop.f32.mrb[101].mxu1 }
 0x297   : > { %v3319_v24 = vpop.f32.mrb[65].mxu0  ;;  %v3406_v29 = vadd.f32 %v3405_v23, %v3404_v11 }
 0x298   : > { %v4786_v4 = vadd.f32 %v3397_v58, %v2107_v57  ;;  %v3320_v31 = vadd.f32 %v3319_v24, %v3318_v21 }
 0x299   : > { %v3407_v33 = vpop.f32.mrb[102].mxu1 }
 0x29a   : > { %v2108_v50 = vadd.f32 %v3320_v31, %v4748_v13  ;;  %v3321_v18 = vpop.f32.mrb[66].mxu0  ;;  %v3408_v27 = vpop.f32.mrb[103].mxu1 }
 0x29b   : > { %v3322_v14 = vpop.f32.mrb[67].mxu0  ;;  %v3409_v34 = vadd.f32 %v3408_v27, %v3407_v33 }
 0x29c   : > { %v4789_v26 = vadd.f32 %v3400_v0, %v2108_v50  ;;  %v3323_v37 = vadd.f32 %v3322_v14, %v3321_v18  ;;  %v4831_v18 = vld [vmem:[%s4948_s5] ss:$0 sm:$0xff] }
 0x29d   : > { %v3410_v40 = vpop.f32.mrb[104].mxu1 }
 0x29e   : > { %v2109_v3 = vadd.f32 %v3323_v37, %v4750_v25  ;;  %v3324_v42 = vpop.f32.mrb[68].mxu0  ;;  %v3411_v44 = vpop.f32.mrb[105].mxu1 }
 0x29f   : > { %v3325_v19 = vpop.f32.mrb[69].mxu0  ;;  %v3412_v22 = vadd.f32 %v3411_v44, %v3410_v40 }
 0x2a0   : > { %v4792_v15 = vadd.f32 %v3403_v12, %v2109_v3  ;;  %v3326_v48 = vadd.f32 %v3325_v19, %v3324_v42 }
 0x2a1   : > { %v3413_v49 = vpop.f32.mrb[106].mxu1 }
 0x2a2   : > { %v2110_v13 = vadd.f32 %v3326_v48, %v4752_v36  ;;  %v3327_v51 = vpop.f32.mrb[70].mxu0  ;;  %v3414_v41 = vpop.f32.mrb[107].mxu1 }
 0x2a3   : > { %v3328_v54 = vpop.f32.mrb[71].mxu0  ;;  %v3415_v55 = vadd.f32 %v3414_v41, %v3413_v49 }
 0x2a4   : > { %v4795_v39 = vadd.f32 %v3406_v29, %v2110_v13  ;;  %v3329_v20 = vadd.f32 %v3328_v54, %v3327_v51 }
 0x2a5   : > { %v3416_v56 = vpop.f32.mrb[108].mxu1 }
 0x2a6   : > { %v2111_v25 = vadd.f32 %v3329_v20, %v4754_v38  ;;  %v3330_v35 = vpop.f32.mrb[72].mxu0  ;;  %v3417_v58 = vpop.f32.mrb[109].mxu1 }
 0x2a7   : > { %v3331_v61 = vpop.f32.mrb[73].mxu0  ;;  %v3418_v46 = vadd.f32 %v3417_v58, %v3416_v56 }
 0x2a8   : > { %v4798_v47 = vadd.f32 %v3409_v34, %v2111_v25  ;;  %v3332_v59 = vadd.f32 %v3331_v61, %v3330_v35 }
 0x2a9   : > { %v3419_v62 = vpop.f32.mrb[110].mxu1 }
 0x2aa   : > { %v2112_v36 = vadd.f32 %v3332_v59, %v4756_v32  ;;  %v3333_v63 = vpop.f32.mrb[74].mxu0  ;;  %v3420_v0 = vpop.f32.mrb[111].mxu1 }
 0x2ab   : > { %v3334_v6 = vpop.f32.mrb[75].mxu0  ;;  %v3421_v7 = vadd.f32 %v3420_v0, %v3419_v62 }
 0x2ac   : > { %v4801_v52 = vadd.f32 %v3412_v22, %v2112_v36  ;;  %v3335_v8 = vadd.f32 %v3334_v6, %v3333_v63 }
 0x2ae   : > { %v2113_v38 = vadd.f32 %v3335_v8, %v4758_v5  ;;  %v3336_v9 = vpop.f32.mrb[76].mxu0  ;;  %v4815_v5 = vld [vmem:[%s4947_s4] ss:$0 sm:$0xff] }
 0x2af   : > { %v3337_v10 = vpop.f32.mrb[77].mxu0  ;;  %v3890_v31 = vadd.f32 %v4815_v5, %v4768_v30  ;;  %v3893_v50 = vadd.f32 %v4815_v5, %v4765_v28  ;;  %v3902_v28 = vadd.f32 %v4815_v5, %v4780_v1  ;;  %v3905_v3 = vadd.f32 %v4815_v5, %v4777_v60 }
 0x2b0   : > { %v4804_v12 = vadd.f32 %v3415_v55, %v2113_v38  ;;  %v3338_v17 = vadd.f32 %v3337_v10, %v3336_v9  ;;  %v3908_v13 = vadd.f32 %v4815_v5, %v4786_v4  ;;  %v3911_v54 = vadd.f32 %v4815_v5, %v4783_v16 }
 0x2b1   : > { %v3903_v49 = vadd.f32 %v3902_v28, %v4831_v18  ;;  %v3906_v41 = vadd.f32 %v3905_v3, %v4831_v18  ;;  %v3914_v4 = vadd.f32 %v4815_v5, %v4792_v15  ;;  %v3917_v16 = vadd.f32 %v4815_v5, %v4789_v26 }
 0x2b2   : > { %v2114_v11 = vadd.f32 %v3338_v17, %v4760_v43  ;;  %v3339_v57 = vpop.f32.mrb[78].mxu0  ;;  %v3896_v43 = vadd.f32 %v4815_v5, %v4774_v53  ;;  %v3909_v35 = vadd.f32 %v3908_v13, %v4831_v18  ;;  %v3920_v15 = vadd.f32 %v4815_v5, %v4798_v47 }
 0x2b3   : > { %v3340_v32 = vpop.f32.mrb[79].mxu0  ;;  %v3915_v0 = vadd.f32 %v3914_v4, %v4831_v18  ;;  %v3918_v8 = vadd.f32 %v3917_v16, %v4831_v18  ;;  %v3923_v26 = vadd.f32 %v4815_v5, %v4795_v39  ;;  %v3926_v47 = vadd.f32 %v4815_v5, %v4804_v12 }
 0x2b4   : > { %v4807_v21 = vadd.f32 %v3418_v46, %v2114_v11  ;;  %v3341_v23 = vadd.f32 %v3340_v32, %v3339_v57  ;;  %v3897_v53 = vadd.f32 %v3896_v43, %v4831_v18  ;;  %v3912_v46 = vadd.f32 %v3911_v54, %v4831_v18 }
 0x2b5   : > { %v3921_v11 = vadd.f32 %v3920_v15, %v4831_v18  ;;  %v3929_v39 = vadd.f32 %v4815_v5, %v4801_v52 }
 0x2b6   : > { %v2115_v24 = vadd.f32 %v3341_v23, %v4762_v2  ;;  %v3899_v2 = vadd.f32 %v4815_v5, %v4771_v45  ;;  %v3924_v23 = vadd.f32 %v3923_v26, %v4831_v18  ;;  %v3935_v52 = vadd.f32 %v4815_v5, %v4807_v21 }
 0x2b8   : > { %v4810_v29 = vadd.f32 %v3421_v7, %v2115_v24  ;;  %v3900_v40 = vadd.f32 %v3899_v2, %v4831_v18 }
 0x2ba   : > { %v3932_v12 = vadd.f32 %v4815_v5, %v4810_v29 }
 0x2d6   : > { %v3668_v33 = vpop.f32.mrb[80].mxu0 }
 0x2d7   : > { %v3891_v27 = vadd.f32 %v3890_v31, %v3668_v33  ;;  %v2698_v14 = vpop.f32.mrb[81].mxu0 }
 0x2d8   : > { %v3894_v30 = vadd.f32 %v3893_v50, %v2698_v14  ;;  %v3927_v50 = vadd.f32 %v3926_v47, %v4831_v18  ;;  %v3930_v14 = vadd.f32 %v3929_v39, %v4831_v18 }
 0x2d9   : > { %v3892_v34 = vadd.f32 %v3891_v27, %v4831_v18 }
 0x2da   : > { %v3895_v37 = vadd.f32 %v3894_v30, %v4831_v18  ;;  %v3671_v45 = vpop.f32.mrb[82].mxu0 }
 0x2db   : > { %v2794_v42 = vmax.f32 %v3892_v34, 0.0  ;;  %v3898_v44 = vadd.f32 %v3897_v53, %v3671_v45  ;;  %v2708_v19 = vpop.f32.mrb[83].mxu0 }
 0x2dc   : > { %v2793_v22 = vmax.f32 %v3895_v37, 0.0  ;;  %v3901_v48 = vadd.f32 %v3900_v40, %v2708_v19  ;;  %v3933_v37 = vadd.f32 %v3932_v12, %v4831_v18  ;;  %v3936_v40 = vadd.f32 %v3935_v52, %v4831_v18 }
 0x2dd   : > { %2810 = vst [vmem:[%s4841_s20 + $0x8] sm:$0xff] %v2794_v42  ;;  %v2796_v1 = vmax.f32 %v3898_v44, 0.0 }
 0x2de   : > { %2809 = vst [vmem:[%s4841_s20] sm:$0xff] %v2793_v22  ;;  %v2795_v60 = vmax.f32 %v3901_v48, 0.0  ;;  %v3674_v51 = vpop.f32.mrb[84].mxu0 }
 0x2df   : > { %2812 = vst [vmem:[%s4841_s20 + $0x18] sm:$0xff] %v2796_v1  ;;  %v3904_v55 = vadd.f32 %v3903_v49, %v3674_v51  ;;  %v2718_v20 = vpop.f32.mrb[85].mxu0 }
 0x2e0   : > { %2811 = vst [vmem:[%s4841_s20 + $0x10] sm:$0xff] %v2795_v60  ;;  %v3907_v56 = vadd.f32 %v3906_v41, %v2718_v20 }
 0x2e1   : > { %v2798_v25 = vmax.f32 %v3904_v55, 0.0 }
 0x2e2   : > { %v2797_v58 = vmax.f32 %v3907_v56, 0.0  ;;  %v3677_v61 = vpop.f32.mrb[86].mxu0 }
 0x2e3   : > { %2814 = vst [vmem:[%s4841_s20 + $0x28] sm:$0xff] %v2798_v25  ;;  %v3910_v59 = vadd.f32 %v3909_v35, %v3677_v61  ;;  %v2728_v62 = vpop.f32.mrb[87].mxu0 }
 0x2e4   : > { %2813 = vst [vmem:[%s4841_s20 + $0x20] sm:$0xff] %v2797_v58  ;;  %v3913_v36 = vadd.f32 %v3912_v46, %v2728_v62 }
 0x2e5   : > { %v2800_v63 = vmax.f32 %v3910_v59, 0.0 }
 0x2e6   : > { %v2799_v6 = vmax.f32 %v3913_v36, 0.0  ;;  %v3680_v7 = vpop.f32.mrb[88].mxu0 }
 0x2e7   : > { %2816 = vst [vmem:[%s4841_s20 + $0x38] sm:$0xff] %v2800_v63  ;;  %v3916_v38 = vadd.f32 %v3915_v0, %v3680_v7  ;;  %v2738_v9 = vpop.f32.mrb[89].mxu0 }
 0x2e8   : > { %2815 = vst [vmem:[%s4841_s20 + $0x30] sm:$0xff] %v2799_v6  ;;  %v3919_v10 = vadd.f32 %v3918_v8, %v2738_v9 }
 0x2e9   : > { %v2802_v17 = vmax.f32 %v3916_v38, 0.0 }
 0x2ea   : > { %v2801_v57 = vmax.f32 %v3919_v10, 0.0  ;;  %v3683_v32 = vpop.f32.mrb[90].mxu0 }
 0x2eb   : > { %2818 = vst [vmem:[%s4841_s20 + $0x48] sm:$0xff] %v2802_v17  ;;  %v3922_v24 = vadd.f32 %v3921_v11, %v3683_v32  ;;  %v2748_v31 = vpop.f32.mrb[91].mxu0 }
 0x2ec   : > { %2817 = vst [vmem:[%s4841_s20 + $0x40] sm:$0xff] %v2801_v57  ;;  %v3925_v43 = vadd.f32 %v3924_v23, %v2748_v31 }
 0x2ed   : > { %v2804_v33 = vmax.f32 %v3922_v24, 0.0 }
 0x2ee   : > { %v2803_v2 = vmax.f32 %v3925_v43, 0.0  ;;  %v3686_v27 = vpop.f32.mrb[92].mxu0 }
 0x2ef   : > { %2820 = vst [vmem:[%s4841_s20 + $0x58] sm:$0xff] %v2804_v33  ;;  %v3928_v30 = vadd.f32 %v3927_v50, %v3686_v27  ;;  %v2758_v34 = vpop.f32.mrb[93].mxu0 }
 0x2f0   : > { %2819 = vst [vmem:[%s4841_s20 + $0x50] sm:$0xff] %v2803_v2  ;;  %v3931_v53 = vadd.f32 %v3930_v14, %v2758_v34 }
 0x2f1   : > { %v2806_v28 = vmax.f32 %v3928_v30, 0.0 }
 0x2f2   : > { %v2805_v29 = vmax.f32 %v3931_v53, 0.0  ;;  %v3689_v45 = vpop.f32.mrb[94].mxu0 }
 0x2f3   : > { %2822 = vst [vmem:[%s4841_s20 + $0x68] sm:$0xff] %v2806_v28  ;;  %v3934_v21 = vadd.f32 %v3933_v37, %v3689_v45  ;;  %v2768_v5 = vpop.f32.mrb[95].mxu0 }
 0x2f4   : > { %2821 = vst [vmem:[%s4841_s20 + $0x60] sm:$0xff] %v2805_v29  ;;  %v3937_v3 = vadd.f32 %v3936_v40, %v2768_v5 }
 0x2f5   : > { %v2808_v42 = vmax.f32 %v3934_v21, 0.0 }
 0x2f6   : > { %v2807_v18 = vmax.f32 %v3937_v3, 0.0 }
 0x2f7   : > { %2824 = vst [vmem:[%s4841_s20 + $0x78] sm:$0xff] %v2808_v42 }
 0x2f8   : > { %2823 = vst [vmem:[%s4841_s20 + $0x70] sm:$0xff] %v2807_v18 }
 0x2f9   : > { %4052 = shalt.err (!%p4049_p7)
}
 0x2fa   : > { %s4053_s9 = scalar_lea.hbm %s4894_s13, 2048  ;;  %s4057_s18 = scalar_lea.hbm %s4949_s6, 4096 }
 0x2fb   : > { %p4054_p8 = scmp.ne.s32.totalorder %s4894_s13, %s4053_s9  ;;  %p4058_p1 = scmp.lt.u32.totalorder %s4894_s13, %s4949_s6 }
 0x2fc   : > { %p4059_p0 = scmp.lt.u32.totalorder %s4057_s18, %s4053_s9  ;;  %p4061_p6 = scmp.lt.u32.totalorder %s4053_s9, %s4894_s13 }
 0x2fd   : > { %p4055_p11 = pnand %p4054_p8, %p4960_p9 }
 0x2fe   : > { %p4060_p5 = por %p4059_p0, %p4058_p1 }
 0x2ff   : > { %p4056_p13 = pneg %p4055_p11 }
 0x300   : > { %p4062_p10 = por %p4061_p6, %p4060_p5 }
 0x302   : > { %p4063_p12 = pnand %p4062_p10, %p4056_p13 }
 0x304   : > { %4066 = shalt.err (!%p4063_p12)
}
 0x305   : > { %s4112_s26 = smov 128   ;;  %s4113_s29 = smov 8  }
 0x306   : > { %3959 = dma.vmem_to_hbm [thread:$0]  (%p4960_p9), %s4896_s28, 2048, %s4894_s13, %s4902_s25, %s4112_s26, %s4112_s26, %s4113_s29  }
 0x307 PF: > { %p3971_p2 = scmp.ge.s32.totalorder %s4105_s24, 2  ;;  %s2854_s10 = sand.u32 1, %s4093_s21  }
 0x308   : > { %p4961_p3 = scmp.ne.s32.totalorder %s4954_s8, 0  ;;  %s2855_s14 = scalar_lea.sflag [#allocation5], %s2854_s10 }
 0x30a   : > { %p3966_p4 = pnand %p3971_p2, %p4961_p3 }
 0x30c   : > { %4088 = dma.done.wait (!%p3966_p4), %s2855_s14, 2048  }
 0x30d   : > { %4090 = vsyncadd (!%p3966_p4), %s2855_s14, 4294965248  ;;  %p17_p7 = scmp.ge.s32.totalorder %s4174_s27, 4   ;;  %s4962_s21 = smov %s4097_s22 }
 0x30e   : > { %s4963_s22 = smov %s4101_s23  ;;  %s4964_s23 = smov %s4185_s30 }
 0x30f   : > { %s4965_s24 = smov %s4174_s27  ;;  %19 = sbr.rel (!%p17_p7) target bundleno = 4 (0x4), region = 87 }
 0x316   :  { %2860 = vsyncpa [#allocation4], 1 }
 0x317   :  { %2862 = vsyncpa [#allocation4 + $0x1], 1 }
 0x318   :  { %2863 = vsyncpa [#allocation5], 1 }
 0x319   :  { %2865 = vsyncpa [#allocation5 + $0x1], 1 }

</bundles_post_ra>
